<compile_context>
chip_gen: v7x
topology: tpu7x:2x2x1
jax: 0.10.0
libtpu: 0.0.40
codegen_flags: <defaults>
</compile_context>

<pallas_src>
import math
from functools import partial

import jax
import jax.numpy as jnp
from jax import lax
from jax.experimental import pallas as pl
from jax.experimental.pallas import tpu as pltpu

LN_EPS = 1e-5  # nn.LayerNorm default


def _layer_norm(v, w, b):
    mu = jnp.mean(v, axis=-1, keepdims=True)
    var = jnp.mean(jnp.square(v - mu), axis=-1, keepdims=True)
    return (v - mu) * lax.rsqrt(var + LN_EPS) * w + b


def _gelu_tanh(v):
    # tanh-approx GELU: the tanh goes to the EUP (otherwise idle VLIW slot) instead of a long
    # erf polynomial on the VALU.  Max abs deviation from exact GELU ~3e-4, far below the
    # bf16 matmul noise floor.
    c = math.sqrt(2.0 / math.pi)
    return 0.5 * v * (1.0 + jnp.tanh(c * (v + 0.044715 * v * v * v)))


def attblock_kernel(x_ref,
                    ln1_w, ln1_b, wqkv, bqkv, wo, bo,
                    ln2_w, ln2_b, ln3_w, ln3_b,
                    w1, b1, ln4_w, ln4_b, w2, b2,
                    o_ref, att_buf, *, num_heads):
    BB, S, E = x_ref.shape
    T = BB * S
    dh = E // num_heads
    scale = 1.0 / math.sqrt(dh)
    bf16 = jnp.bfloat16

    # Fold the batch block into the sublane dim: token-wise work runs on one (BB*S, E) tile
    # instead of BB separate (S, E) slivers (fills the 8-sublane vregs).
    x = x_ref[...].reshape(T, E)
    xn = _layer_norm(x, ln1_w[...], ln1_b[...])          # f32 elementwise (v5e-safe)

    # Fused QKV projection: bf16 MXU operands, f32 accumulation.
    qkv = jnp.dot(xn.astype(bf16), wqkv[...],
                  preferred_element_type=jnp.float32) + bqkv[...]

    # Self-attention.  Batch/head loops are static unrolls (tiny at these shapes); each head's
    # output goes straight into the (T, E) VMEM scratch at its column offset, so no
    # jnp.concatenate of dh-wide slices is ever built.
    # TODO(synk): for realistic S, replace the materialized (S, S) scores with a flash-style
    #             KV-tiled online softmax (grid over q blocks, "arbitrary" kv axis).
    for b in range(BB):
        r0 = b * S
        for h in range(num_heads):
            c0 = h * dh
            qh = qkv[r0:r0 + S, c0:c0 + dh].astype(bf16)
            kh = qkv[r0:r0 + S, E + c0:E + c0 + dh].astype(bf16)
            vh = qkv[r0:r0 + S, 2 * E + c0:2 * E + c0 + dh].astype(bf16)
            s = lax.dot_general(qh, kh, (((1,), (1,)), ((), ())),
                                preferred_element_type=jnp.float32) * scale
            # softmax: EUP exp + approximate reciprocal (no vector divide)
            s = s - jnp.max(s, axis=-1, keepdims=True)
            p = jnp.exp(s)
            p = p * pl.reciprocal(jnp.sum(p, axis=-1, keepdims=True), approx=True)
            att_buf[r0:r0 + S, c0:c0 + dh] = jnp.dot(
                p.astype(bf16), vh, preferred_element_type=jnp.float32)

    # Output projection + post-attention norm.
    att = jnp.dot(att_buf[...].astype(bf16), wo[...],
                  preferred_element_type=jnp.float32) + bo[...]
    att = _layer_norm(att, ln2_w[...], ln2_b[...])

    # NOTE: residual uses LN1 output (x was reassigned in the PyTorch forward).
    x1 = xn + att
    x2 = _layer_norm(x1, ln3_w[...], ln3_b[...])

    # MLP: bf16 MXU operands, f32 accumulation; f32 elementwise math.
    h1 = jnp.dot(x2.astype(bf16), w1[...],
                 preferred_element_type=jnp.float32) + b1[...]
    h1 = _gelu_tanh(h1)
    h1 = _layer_norm(h1, ln4_w[...], ln4_b[...])
    h2 = jnp.dot(h1.astype(bf16), w2[...],
                 preferred_element_type=jnp.float32) + b2[...]

    o_ref[...] = (x2 + h2).reshape(BB, S, E)


def _pick_batch_block(B, S, target_rows=256):
    """Largest divisor of B so that BB*S is close to target_rows (amortizes per-step cost)."""
    bb = max(1, min(B, max(1, target_rows // max(S, 1))))
    while B % bb != 0:
        bb -= 1
    return bb


def att_block(x, params, num_heads):
    B, S, E = x.shape
    assert E % num_heads == 0, "embed_dim must be divisible by num_heads"
    Hdim = params["w1_t"].shape[1]            # E * expansion_factor
    BB = _pick_batch_block(B, S)
    T = BB * S

    plist = (params["ln1_w"], params["ln1_b"],
             params["wqkv_t"], params["bqkv"],
             params["wo_t"], params["bo"],
             params["ln2_w"], params["ln2_b"],
             params["ln3_w"], params["ln3_b"],
             params["w1_t"], params["b1"],
             params["ln4_w"], params["ln4_b"],
             params["w2_t"], params["b2"])

    def full2d(a):
        return pl.BlockSpec(a.shape, lambda i: (0, 0))

    in_specs = [pl.BlockSpec((BB, S, E), lambda i: (i, 0, 0))] + [full2d(a) for a in plist]
    out_spec = pl.BlockSpec((BB, S, E), lambda i: (i, 0, 0))

    # Explicit VMEM budget: double-buffered weights + in/out blocks + scratch + a rough bound
    # on live f32 activations, clamped below every generation's physical VMEM.
    wbytes = sum(int(a.size) * a.dtype.itemsize for a in plist)
    blk_bytes = BB * S * E * 4
    act_bytes = (T * 3 * E + 8 * T * E + 2 * T * Hdim) * 4
    budget = 2 * wbytes + 4 * blk_bytes + T * E * 4 + act_bytes + (4 << 20)
    vmem_limit = int(min(max(budget, 16 << 20), 96 << 20))

    return pl.pallas_call(
        partial(attblock_kernel, num_heads=num_heads),
        out_shape=jax.ShapeDtypeStruct((B, S, E), jnp.float32),
        grid=(B // BB,),
        in_specs=in_specs,
        out_specs=out_spec,
        scratch_shapes=[pltpu.VMEM((T, E), jnp.float32)],   # per-head attention accumulator
        compiler_params=pltpu.CompilerParams(
            dimension_semantics=("parallel",),   # batch blocks independent -> v7x megacore
            vmem_limit_bytes=vmem_limit),
    )(x, *plist)


def init_params(key, embed_dim, expansion_factor=2):
    E = embed_dim
    Hdim = E * expansion_factor
    ks = jax.random.split(key, 8)
    scale = 0.05
    return {
        # LayerNorms: PyTorch default init (weight=1, bias=0); kept f32.
        "ln1_w": jnp.ones((1, E), jnp.float32), "ln1_b": jnp.zeros((1, E), jnp.float32),
        "ln2_w": jnp.ones((1, E), jnp.float32), "ln2_b": jnp.zeros((1, E), jnp.float32),
        "ln3_w": jnp.ones((1, E), jnp.float32), "ln3_b": jnp.zeros((1, E), jnp.float32),
        "ln4_w": jnp.ones((1, Hdim), jnp.float32), "ln4_b": jnp.zeros((1, Hdim), jnp.float32),
        # Weight matrices stored pre-transposed (in, out) and in bf16 (MXU-native; halves VMEM).
        "wqkv_t": (scale * jax.random.normal(ks[0], (E, 3 * E))).astype(jnp.bfloat16),
        "bqkv": (0.02 * jax.random.normal(ks[1], (1, 3 * E))).astype(jnp.float32),
        "wo_t": (scale * jax.random.normal(ks[2], (E, E))).astype(jnp.bfloat16),
        "bo": (0.02 * jax.random.normal(ks[3], (1, E))).astype(jnp.float32),
        "w1_t": (scale * jax.random.normal(ks[4], (E, Hdim))).astype(jnp.bfloat16),
        "b1": (0.02 * jax.random.normal(ks[5], (1, Hdim))).astype(jnp.float32),
        "w2_t": (scale * jax.random.normal(ks[6], (Hdim, E))).astype(jnp.bfloat16),
        "b2": (0.02 * jax.random.normal(ks[7], (1, E))).astype(jnp.float32),
    }


def reference(x, p, num_heads):
    # Pure-JAX f32 reference mirroring the PyTorch forward (x_cls/masks = None, exact GELU).
    def ln(v, w, b):
        mu = v.mean(-1, keepdims=True)
        var = ((v - mu) ** 2).mean(-1, keepdims=True)
        return (v - mu) / jnp.sqrt(var + LN_EPS) * w + b

    f32 = lambda a: a.astype(jnp.float32)
    B, S, E = x.shape
    dh = E // num_heads
    xn = ln(x, p["ln1_w"], p["ln1_b"])
    qkv = xn @ f32(p["wqkv_t"]) + p["bqkv"]
    q, k, v = qkv[..., :E], qkv[..., E:2 * E], qkv[..., 2 * E:]

    def split(t):
        return t.reshape(B, S, num_heads, dh).transpose(0, 2, 1, 3)

    qh, kh, vh = split(q), split(k), split(v)
    scores = jnp.einsum("bhqd,bhkd->bhqk", qh, kh) / math.sqrt(dh)
    probs = jax.nn.softmax(scores, -1)
    att = jnp.einsum("bhqk,bhkd->bhqd", probs, vh).transpose(0, 2, 1, 3).reshape(B, S, E)
    att = att @ f32(p["wo_t"]) + p["bo"]
    att = ln(att, p["ln2_w"], p["ln2_b"])
    x1 = xn + att
    x2 = ln(x1, p["ln3_w"], p["ln3_b"])
    h1 = x2 @ f32(p["w1_t"]) + p["b1"]
    h1 = 0.5 * h1 * (1.0 + jax.scipy.special.erf(h1 / jnp.sqrt(2.0)))   # exact GELU (nn.GELU)
    h1 = ln(h1, p["ln4_w"], p["ln4_b"])
    h2 = h1 @ f32(p["w2_t"]) + p["b2"]
    return x2 + h2


if __name__ == "__main__":
    B, S, E = 2, 8, 32
    num_heads = 8
    key = jax.random.PRNGKey(0)
    kx, kp = jax.random.split(key)
    x = jax.random.normal(kx, (B, S, E), dtype=jnp.float32)
    params = init_params(kp, E, expansion_factor=2)

    out = jax.block_until_ready(att_block(x, params, num_heads))
    ref = reference(x, params, num_heads)

    assert out.shape == (B, S, E)
    max_err = float(jnp.max(jnp.abs(out - ref)))
    # Tolerance absorbs bf16 matmul operands, tanh-GELU and approximate-reciprocal softmax.
    assert jnp.allclose(out, ref, atol=5e-2, rtol=5e-2), f"max abs err {max_err}"
    print("KERNEL_OK")
</pallas_src>

<mosaic_0001>
module attributes {stable_mosaic.version = 11 : i64} {
  func.func @attblock_kernel(%arg0: i32, %arg1: memref<2x8x32xf32, #tpu.memory_space<vmem>>, %arg2: memref<1x32xf32, #tpu.memory_space<vmem>>, %arg3: memref<1x32xf32, #tpu.memory_space<vmem>>, %arg4: memref<32x96xbf16, #tpu.memory_space<vmem>>, %arg5: memref<1x96xf32, #tpu.memory_space<vmem>>, %arg6: memref<32x32xbf16, #tpu.memory_space<vmem>>, %arg7: memref<1x32xf32, #tpu.memory_space<vmem>>, %arg8: memref<1x32xf32, #tpu.memory_space<vmem>>, %arg9: memref<1x32xf32, #tpu.memory_space<vmem>>, %arg10: memref<1x32xf32, #tpu.memory_space<vmem>>, %arg11: memref<1x32xf32, #tpu.memory_space<vmem>>, %arg12: memref<32x64xbf16, #tpu.memory_space<vmem>>, %arg13: memref<1x64xf32, #tpu.memory_space<vmem>>, %arg14: memref<1x64xf32, #tpu.memory_space<vmem>>, %arg15: memref<1x64xf32, #tpu.memory_space<vmem>>, %arg16: memref<64x32xbf16, #tpu.memory_space<vmem>>, %arg17: memref<1x32xf32, #tpu.memory_space<vmem>>, %arg18: memref<2x8x32xf32, #tpu.memory_space<vmem>>, %arg19: memref<16x32xf32, #tpu.memory_space<vmem>>) attributes {dimension_semantics = [#tpu.dimension_semantics<parallel>], iteration_bounds = array<i64: 1>, scalar_prefetch = 0 : i64, scratch_operands = 1 : i64, tpu.core_type = #tpu.core_type<tc>, window_params = [{transform_indices = @transform_0, window_bounds = array<i64: 2, 8, 32>}, {pipeline_mode = #tpu.pipeline_mode<synchronous>, transform_indices = @transform_1, window_bounds = array<i64: 1, 32>}, {pipeline_mode = #tpu.pipeline_mode<synchronous>, transform_indices = @transform_2, window_bounds = array<i64: 1, 32>}, {pipeline_mode = #tpu.pipeline_mode<synchronous>, transform_indices = @transform_3, window_bounds = array<i64: 32, 96>}, {pipeline_mode = #tpu.pipeline_mode<synchronous>, transform_indices = @transform_4, window_bounds = array<i64: 1, 96>}, {pipeline_mode = #tpu.pipeline_mode<synchronous>, transform_indices = @transform_5, window_bounds = array<i64: 32, 32>}, {pipeline_mode = #tpu.pipeline_mode<synchronous>, transform_indices = @transform_6, window_bounds = array<i64: 1, 32>}, {pipeline_mode = #tpu.pipeline_mode<synchronous>, transform_indices = @transform_7, window_bounds = array<i64: 1, 32>}, {pipeline_mode = #tpu.pipeline_mode<synchronous>, transform_indices = @transform_8, window_bounds = array<i64: 1, 32>}, {pipeline_mode = #tpu.pipeline_mode<synchronous>, transform_indices = @transform_9, window_bounds = array<i64: 1, 32>}, {pipeline_mode = #tpu.pipeline_mode<synchronous>, transform_indices = @transform_10, window_bounds = array<i64: 1, 32>}, {pipeline_mode = #tpu.pipeline_mode<synchronous>, transform_indices = @transform_11, window_bounds = array<i64: 32, 64>}, {pipeline_mode = #tpu.pipeline_mode<synchronous>, transform_indices = @transform_12, window_bounds = array<i64: 1, 64>}, {pipeline_mode = #tpu.pipeline_mode<synchronous>, transform_indices = @transform_13, window_bounds = array<i64: 1, 64>}, {pipeline_mode = #tpu.pipeline_mode<synchronous>, transform_indices = @transform_14, window_bounds = array<i64: 1, 64>}, {pipeline_mode = #tpu.pipeline_mode<synchronous>, transform_indices = @transform_15, window_bounds = array<i64: 64, 32>}, {pipeline_mode = #tpu.pipeline_mode<synchronous>, transform_indices = @transform_16, window_bounds = array<i64: 1, 32>}, {transform_indices = @transform_17, window_bounds = array<i64: 2, 8, 32>}]} {
    %c0 = arith.constant 0 : index
    %c0_0 = arith.constant 0 : index
    %c0_1 = arith.constant 0 : index
    %0 = vector.load %arg1[%c0, %c0_0, %c0_1] : memref<2x8x32xf32, #tpu.memory_space<vmem>>, vector<2x8x32xf32>
    %1 = vector.shape_cast %0 : vector<2x8x32xf32> to vector<16x32xf32>
    %c0_2 = arith.constant 0 : index
    %c0_3 = arith.constant 0 : index
    %2 = vector.load %arg2[%c0_2, %c0_3] : memref<1x32xf32, #tpu.memory_space<vmem>>, vector<1x32xf32>
    %c0_4 = arith.constant 0 : index
    %c0_5 = arith.constant 0 : index
    %3 = vector.load %arg3[%c0_4, %c0_5] : memref<1x32xf32, #tpu.memory_space<vmem>>, vector<1x32xf32>
    %cst = arith.constant dense<0.000000e+00> : vector<16xf32>
    %4 = vector.multi_reduction <add>, %1, %cst [1] : vector<16x32xf32> to vector<16xf32>
    %5 = vector.shape_cast %4 : vector<16xf32> to vector<16x1xf32>
    %cst_6 = arith.constant 3.200000e+01 : f32
    %6 = vector.broadcast %cst_6 : f32 to vector<16x1xf32>
    %7 = arith.divf %5, %6 : vector<16x1xf32>
    %8 = vector.broadcast %7 : vector<16x1xf32> to vector<16x32xf32>
    %9 = arith.subf %1, %8 : vector<16x32xf32>
    %10 = arith.mulf %9, %9 : vector<16x32xf32>
    %cst_7 = arith.constant dense<0.000000e+00> : vector<16xf32>
    %11 = vector.multi_reduction <add>, %10, %cst_7 [1] : vector<16x32xf32> to vector<16xf32>
    %12 = vector.shape_cast %11 : vector<16xf32> to vector<16x1xf32>
    %cst_8 = arith.constant 3.200000e+01 : f32
    %13 = vector.broadcast %cst_8 : f32 to vector<16x1xf32>
    %14 = arith.divf %12, %13 : vector<16x1xf32>
    %15 = vector.broadcast %7 : vector<16x1xf32> to vector<16x32xf32>
    %16 = arith.subf %1, %15 : vector<16x32xf32>
    %cst_9 = arith.constant 9.99999974E-6 : f32
    %17 = vector.broadcast %cst_9 : f32 to vector<16x1xf32>
    %18 = arith.addf %14, %17 : vector<16x1xf32>
    %19 = math.rsqrt %18 : vector<16x1xf32>
    %20 = vector.broadcast %19 : vector<16x1xf32> to vector<16x32xf32>
    %21 = arith.mulf %16, %20 : vector<16x32xf32>
    %22 = vector.broadcast %2 : vector<1x32xf32> to vector<16x32xf32>
    %23 = arith.mulf %21, %22 : vector<16x32xf32>
    %24 = vector.broadcast %3 : vector<1x32xf32> to vector<16x32xf32>
    %25 = arith.addf %23, %24 : vector<16x32xf32>
    %26 = arith.truncf %25 : vector<16x32xf32> to vector<16x32xbf16>
    %c0_10 = arith.constant 0 : index
    %c0_11 = arith.constant 0 : index
    %27 = vector.load %arg4[%c0_10, %c0_11] : memref<32x96xbf16, #tpu.memory_space<vmem>>, vector<32x96xbf16>
    %cst_12 = arith.constant dense<0.000000e+00> : vector<16x96xf32>
    %28 = tpu.matmul %26, %27, %cst_12 {dimension_numbers = #tpu.dot_dimension_numbers<[1], [0], [0], [1], [0, 0, 1, 1], [], []>} : vector<16x32xbf16>, vector<32x96xbf16>, vector<16x96xf32> -> vector<16x96xf32>
    %c0_13 = arith.constant 0 : index
    %c0_14 = arith.constant 0 : index
    %29 = vector.load %arg5[%c0_13, %c0_14] : memref<1x96xf32, #tpu.memory_space<vmem>>, vector<1x96xf32>
    %30 = vector.broadcast %29 : vector<1x96xf32> to vector<16x96xf32>
    %31 = arith.addf %28, %30 : vector<16x96xf32>
    %32 = vector.extract_strided_slice %31 {offsets = [0, 0], sizes = [8, 4], strides = [1, 1]} : vector<16x96xf32> to vector<8x4xf32>
    %33 = arith.truncf %32 : vector<8x4xf32> to vector<8x4xbf16>
    %34 = vector.extract_strided_slice %31 {offsets = [0, 32], sizes = [8, 4], strides = [1, 1]} : vector<16x96xf32> to vector<8x4xf32>
    %35 = arith.truncf %34 : vector<8x4xf32> to vector<8x4xbf16>
    %36 = vector.extract_strided_slice %31 {offsets = [0, 64], sizes = [8, 4], strides = [1, 1]} : vector<16x96xf32> to vector<8x4xf32>
    %37 = arith.truncf %36 : vector<8x4xf32> to vector<8x4xbf16>
    %cst_15 = arith.constant dense<0.000000e+00> : vector<8x8xf32>
    %38 = tpu.matmul %33, %35, %cst_15 {dimension_numbers = #tpu.dot_dimension_numbers<[1], [1], [0], [0], [0, 0, 1, 0], [], []>} : vector<8x4xbf16>, vector<8x4xbf16>, vector<8x8xf32> -> vector<8x8xf32>
    %cst_16 = arith.constant 5.000000e-01 : f32
    %39 = vector.broadcast %cst_16 : f32 to vector<8x8xf32>
    %40 = arith.mulf %38, %39 : vector<8x8xf32>
    %cst_17 = arith.constant dense<0xFF800000> : vector<8xf32>
    %41 = vector.multi_reduction <maximumf>, %40, %cst_17 [1] : vector<8x8xf32> to vector<8xf32>
    %42 = vector.shape_cast %41 : vector<8xf32> to vector<8x1xf32>
    %43 = vector.broadcast %42 : vector<8x1xf32> to vector<8x8xf32>
    %44 = arith.subf %40, %43 : vector<8x8xf32>
    %45 = math.exp %44 : vector<8x8xf32>
    %cst_18 = arith.constant dense<0.000000e+00> : vector<8xf32>
    %46 = vector.multi_reduction <add>, %45, %cst_18 [1] : vector<8x8xf32> to vector<8xf32>
    %47 = vector.shape_cast %46 : vector<8xf32> to vector<8x1xf32>
    %48 = tpu.reciprocal %47 {approx = true} : vector<8x1xf32> -> vector<8x1xf32>
    %49 = vector.broadcast %48 : vector<8x1xf32> to vector<8x8xf32>
    %50 = arith.mulf %45, %49 : vector<8x8xf32>
    %51 = arith.truncf %50 : vector<8x8xf32> to vector<8x8xbf16>
    %cst_19 = arith.constant dense<0.000000e+00> : vector<8x4xf32>
    %52 = tpu.matmul %51, %37, %cst_19 {dimension_numbers = #tpu.dot_dimension_numbers<[1], [0], [0], [1], [0, 0, 1, 1], [], []>} : vector<8x8xbf16>, vector<8x4xbf16>, vector<8x4xf32> -> vector<8x4xf32>
    %c0_20 = arith.constant 0 : index
    %c0_21 = arith.constant 0 : index
    %53 = vector.load %arg19[%c0_20, %c0_21] : memref<16x32xf32, #tpu.memory_space<vmem>>, vector<8x4xf32>
    tpu.vector_store %arg19[%c0_20, %c0_21], %52 {strides = array<i32>} : memref<16x32xf32, #tpu.memory_space<vmem>>, vector<8x4xf32>,
    %54 = vector.extract_strided_slice %31 {offsets = [0, 4], sizes = [8, 4], strides = [1, 1]} : vector<16x96xf32> to vector<8x4xf32>
    %55 = arith.truncf %54 : vector<8x4xf32> to vector<8x4xbf16>
    %56 = vector.extract_strided_slice %31 {offsets = [0, 36], sizes = [8, 4], strides = [1, 1]} : vector<16x96xf32> to vector<8x4xf32>
    %57 = arith.truncf %56 : vector<8x4xf32> to vector<8x4xbf16>
    %58 = vector.extract_strided_slice %31 {offsets = [0, 68], sizes = [8, 4], strides = [1, 1]} : vector<16x96xf32> to vector<8x4xf32>
    %59 = arith.truncf %58 : vector<8x4xf32> to vector<8x4xbf16>
    %cst_22 = arith.constant dense<0.000000e+00> : vector<8x8xf32>
    %60 = tpu.matmul %55, %57, %cst_22 {dimension_numbers = #tpu.dot_dimension_numbers<[1], [1], [0], [0], [0, 0, 1, 0], [], []>} : vector<8x4xbf16>, vector<8x4xbf16>, vector<8x8xf32> -> vector<8x8xf32>
    %cst_23 = arith.constant 5.000000e-01 : f32
    %61 = vector.broadcast %cst_23 : f32 to vector<8x8xf32>
    %62 = arith.mulf %60, %61 : vector<8x8xf32>
    %cst_24 = arith.constant dense<0xFF800000> : vector<8xf32>
    %63 = vector.multi_reduction <maximumf>, %62, %cst_24 [1] : vector<8x8xf32> to vector<8xf32>
    %64 = vector.shape_cast %63 : vector<8xf32> to vector<8x1xf32>
    %65 = vector.broadcast %64 : vector<8x1xf32> to vector<8x8xf32>
    %66 = arith.subf %62, %65 : vector<8x8xf32>
    %67 = math.exp %66 : vector<8x8xf32>
    %cst_25 = arith.constant dense<0.000000e+00> : vector<8xf32>
    %68 = vector.multi_reduction <add>, %67, %cst_25 [1] : vector<8x8xf32> to vector<8xf32>
    %69 = vector.shape_cast %68 : vector<8xf32> to vector<8x1xf32>
    %70 = tpu.reciprocal %69 {approx = true} : vector<8x1xf32> -> vector<8x1xf32>
    %71 = vector.broadcast %70 : vector<8x1xf32> to vector<8x8xf32>
    %72 = arith.mulf %67, %71 : vector<8x8xf32>
    %73 = arith.truncf %72 : vector<8x8xf32> to vector<8x8xbf16>
    %cst_26 = arith.constant dense<0.000000e+00> : vector<8x4xf32>
    %74 = tpu.matmul %73, %59, %cst_26 {dimension_numbers = #tpu.dot_dimension_numbers<[1], [0], [0], [1], [0, 0, 1, 1], [], []>} : vector<8x8xbf16>, vector<8x4xbf16>, vector<8x4xf32> -> vector<8x4xf32>
    %c0_27 = arith.constant 0 : index
    %c4 = arith.constant 4 : index
    %75 = vector.load %arg19[%c0_27, %c4] : memref<16x32xf32, #tpu.memory_space<vmem>>, vector<8x4xf32>
    tpu.vector_store %arg19[%c0_27, %c4], %74 {strides = array<i32>} : memref<16x32xf32, #tpu.memory_space<vmem>>, vector<8x4xf32>,
    %76 = vector.extract_strided_slice %31 {offsets = [0, 8], sizes = [8, 4], strides = [1, 1]} : vector<16x96xf32> to vector<8x4xf32>
    %77 = arith.truncf %76 : vector<8x4xf32> to vector<8x4xbf16>
    %78 = vector.extract_strided_slice %31 {offsets = [0, 40], sizes = [8, 4], strides = [1, 1]} : vector<16x96xf32> to vector<8x4xf32>
    %79 = arith.truncf %78 : vector<8x4xf32> to vector<8x4xbf16>
    %80 = vector.extract_strided_slice %31 {offsets = [0, 72], sizes = [8, 4], strides = [1, 1]} : vector<16x96xf32> to vector<8x4xf32>
    %81 = arith.truncf %80 : vector<8x4xf32> to vector<8x4xbf16>
    %cst_28 = arith.constant dense<0.000000e+00> : vector<8x8xf32>
    %82 = tpu.matmul %77, %79, %cst_28 {dimension_numbers = #tpu.dot_dimension_numbers<[1], [1], [0], [0], [0, 0, 1, 0], [], []>} : vector<8x4xbf16>, vector<8x4xbf16>, vector<8x8xf32> -> vector<8x8xf32>
    %cst_29 = arith.constant 5.000000e-01 : f32
    %83 = vector.broadcast %cst_29 : f32 to vector<8x8xf32>
    %84 = arith.mulf %82, %83 : vector<8x8xf32>
    %cst_30 = arith.constant dense<0xFF800000> : vector<8xf32>
    %85 = vector.multi_reduction <maximumf>, %84, %cst_30 [1] : vector<8x8xf32> to vector<8xf32>
    %86 = vector.shape_cast %85 : vector<8xf32> to vector<8x1xf32>
    %87 = vector.broadcast %86 : vector<8x1xf32> to vector<8x8xf32>
    %88 = arith.subf %84, %87 : vector<8x8xf32>
    %89 = math.exp %88 : vector<8x8xf32>
    %cst_31 = arith.constant dense<0.000000e+00> : vector<8xf32>
    %90 = vector.multi_reduction <add>, %89, %cst_31 [1] : vector<8x8xf32> to vector<8xf32>
    %91 = vector.shape_cast %90 : vector<8xf32> to vector<8x1xf32>
    %92 = tpu.reciprocal %91 {approx = true} : vector<8x1xf32> -> vector<8x1xf32>
    %93 = vector.broadcast %92 : vector<8x1xf32> to vector<8x8xf32>
    %94 = arith.mulf %89, %93 : vector<8x8xf32>
    %95 = arith.truncf %94 : vector<8x8xf32> to vector<8x8xbf16>
    %cst_32 = arith.constant dense<0.000000e+00> : vector<8x4xf32>
    %96 = tpu.matmul %95, %81, %cst_32 {dimension_numbers = #tpu.dot_dimension_numbers<[1], [0], [0], [1], [0, 0, 1, 1], [], []>} : vector<8x8xbf16>, vector<8x4xbf16>, vector<8x4xf32> -> vector<8x4xf32>
    %c0_33 = arith.constant 0 : index
    %c8 = arith.constant 8 : index
    %97 = vector.load %arg19[%c0_33, %c8] : memref<16x32xf32, #tpu.memory_space<vmem>>, vector<8x4xf32>
    tpu.vector_store %arg19[%c0_33, %c8], %96 {strides = array<i32>} : memref<16x32xf32, #tpu.memory_space<vmem>>, vector<8x4xf32>,
    %98 = vector.extract_strided_slice %31 {offsets = [0, 12], sizes = [8, 4], strides = [1, 1]} : vector<16x96xf32> to vector<8x4xf32>
    %99 = arith.truncf %98 : vector<8x4xf32> to vector<8x4xbf16>
    %100 = vector.extract_strided_slice %31 {offsets = [0, 44], sizes = [8, 4], strides = [1, 1]} : vector<16x96xf32> to vector<8x4xf32>
    %101 = arith.truncf %100 : vector<8x4xf32> to vector<8x4xbf16>
    %102 = vector.extract_strided_slice %31 {offsets = [0, 76], sizes = [8, 4], strides = [1, 1]} : vector<16x96xf32> to vector<8x4xf32>
    %103 = arith.truncf %102 : vector<8x4xf32> to vector<8x4xbf16>
    %cst_34 = arith.constant dense<0.000000e+00> : vector<8x8xf32>
    %104 = tpu.matmul %99, %101, %cst_34 {dimension_numbers = #tpu.dot_dimension_numbers<[1], [1], [0], [0], [0, 0, 1, 0], [], []>} : vector<8x4xbf16>, vector<8x4xbf16>, vector<8x8xf32> -> vector<8x8xf32>
    %cst_35 = arith.constant 5.000000e-01 : f32
    %105 = vector.broadcast %cst_35 : f32 to vector<8x8xf32>
    %106 = arith.mulf %104, %105 : vector<8x8xf32>
    %cst_36 = arith.constant dense<0xFF800000> : vector<8xf32>
    %107 = vector.multi_reduction <maximumf>, %106, %cst_36 [1] : vector<8x8xf32> to vector<8xf32>
    %108 = vector.shape_cast %107 : vector<8xf32> to vector<8x1xf32>
    %109 = vector.broadcast %108 : vector<8x1xf32> to vector<8x8xf32>
    %110 = arith.subf %106, %109 : vector<8x8xf32>
    %111 = math.exp %110 : vector<8x8xf32>
    %cst_37 = arith.constant dense<0.000000e+00> : vector<8xf32>
    %112 = vector.multi_reduction <add>, %111, %cst_37 [1] : vector<8x8xf32> to vector<8xf32>
    %113 = vector.shape_cast %112 : vector<8xf32> to vector<8x1xf32>
    %114 = tpu.reciprocal %113 {approx = true} : vector<8x1xf32> -> vector<8x1xf32>
    %115 = vector.broadcast %114 : vector<8x1xf32> to vector<8x8xf32>
    %116 = arith.mulf %111, %115 : vector<8x8xf32>
    %117 = arith.truncf %116 : vector<8x8xf32> to vector<8x8xbf16>
    %cst_38 = arith.constant dense<0.000000e+00> : vector<8x4xf32>
    %118 = tpu.matmul %117, %103, %cst_38 {dimension_numbers = #tpu.dot_dimension_numbers<[1], [0], [0], [1], [0, 0, 1, 1], [], []>} : vector<8x8xbf16>, vector<8x4xbf16>, vector<8x4xf32> -> vector<8x4xf32>
    %c0_39 = arith.constant 0 : index
    %c12 = arith.constant 12 : index
    %119 = vector.load %arg19[%c0_39, %c12] : memref<16x32xf32, #tpu.memory_space<vmem>>, vector<8x4xf32>
    tpu.vector_store %arg19[%c0_39, %c12], %118 {strides = array<i32>} : memref<16x32xf32, #tpu.memory_space<vmem>>, vector<8x4xf32>,
    %120 = vector.extract_strided_slice %31 {offsets = [0, 16], sizes = [8, 4], strides = [1, 1]} : vector<16x96xf32> to vector<8x4xf32>
    %121 = arith.truncf %120 : vector<8x4xf32> to vector<8x4xbf16>
    %122 = vector.extract_strided_slice %31 {offsets = [0, 48], sizes = [8, 4], strides = [1, 1]} : vector<16x96xf32> to vector<8x4xf32>
    %123 = arith.truncf %122 : vector<8x4xf32> to vector<8x4xbf16>
    %124 = vector.extract_strided_slice %31 {offsets = [0, 80], sizes = [8, 4], strides = [1, 1]} : vector<16x96xf32> to vector<8x4xf32>
    %125 = arith.truncf %124 : vector<8x4xf32> to vector<8x4xbf16>
    %cst_40 = arith.constant dense<0.000000e+00> : vector<8x8xf32>
    %126 = tpu.matmul %121, %123, %cst_40 {dimension_numbers = #tpu.dot_dimension_numbers<[1], [1], [0], [0], [0, 0, 1, 0], [], []>} : vector<8x4xbf16>, vector<8x4xbf16>, vector<8x8xf32> -> vector<8x8xf32>
    %cst_41 = arith.constant 5.000000e-01 : f32
    %127 = vector.broadcast %cst_41 : f32 to vector<8x8xf32>
    %128 = arith.mulf %126, %127 : vector<8x8xf32>
    %cst_42 = arith.constant dense<0xFF800000> : vector<8xf32>
    %129 = vector.multi_reduction <maximumf>, %128, %cst_42 [1] : vector<8x8xf32> to vector<8xf32>
    %130 = vector.shape_cast %129 : vector<8xf32> to vector<8x1xf32>
    %131 = vector.broadcast %130 : vector<8x1xf32> to vector<8x8xf32>
    %132 = arith.subf %128, %131 : vector<8x8xf32>
    %133 = math.exp %132 : vector<8x8xf32>
    %cst_43 = arith.constant dense<0.000000e+00> : vector<8xf32>
    %134 = vector.multi_reduction <add>, %133, %cst_43 [1] : vector<8x8xf32> to vector<8xf32>
    %135 = vector.shape_cast %134 : vector<8xf32> to vector<8x1xf32>
    %136 = tpu.reciprocal %135 {approx = true} : vector<8x1xf32> -> vector<8x1xf32>
    %137 = vector.broadcast %136 : vector<8x1xf32> to vector<8x8xf32>
    %138 = arith.mulf %133, %137 : vector<8x8xf32>
    %139 = arith.truncf %138 : vector<8x8xf32> to vector<8x8xbf16>
    %cst_44 = arith.constant dense<0.000000e+00> : vector<8x4xf32>
    %140 = tpu.matmul %139, %125, %cst_44 {dimension_numbers = #tpu.dot_dimension_numbers<[1], [0], [0], [1], [0, 0, 1, 1], [], []>} : vector<8x8xbf16>, vector<8x4xbf16>, vector<8x4xf32> -> vector<8x4xf32>
    %c0_45 = arith.constant 0 : index
    %c16 = arith.constant 16 : index
    %141 = vector.load %arg19[%c0_45, %c16] : memref<16x32xf32, #tpu.memory_space<vmem>>, vector<8x4xf32>
    tpu.vector_store %arg19[%c0_45, %c16], %140 {strides = array<i32>} : memref<16x32xf32, #tpu.memory_space<vmem>>, vector<8x4xf32>,
    %142 = vector.extract_strided_slice %31 {offsets = [0, 20], sizes = [8, 4], strides = [1, 1]} : vector<16x96xf32> to vector<8x4xf32>
    %143 = arith.truncf %142 : vector<8x4xf32> to vector<8x4xbf16>
    %144 = vector.extract_strided_slice %31 {offsets = [0, 52], sizes = [8, 4], strides = [1, 1]} : vector<16x96xf32> to vector<8x4xf32>
    %145 = arith.truncf %144 : vector<8x4xf32> to vector<8x4xbf16>
    %146 = vector.extract_strided_slice %31 {offsets = [0, 84], sizes = [8, 4], strides = [1, 1]} : vector<16x96xf32> to vector<8x4xf32>
    %147 = arith.truncf %146 : vector<8x4xf32> to vector<8x4xbf16>
    %cst_46 = arith.constant dense<0.000000e+00> : vector<8x8xf32>
    %148 = tpu.matmul %143, %145, %cst_46 {dimension_numbers = #tpu.dot_dimension_numbers<[1], [1], [0], [0], [0, 0, 1, 0], [], []>} : vector<8x4xbf16>, vector<8x4xbf16>, vector<8x8xf32> -> vector<8x8xf32>
    %cst_47 = arith.constant 5.000000e-01 : f32
    %149 = vector.broadcast %cst_47 : f32 to vector<8x8xf32>
    %150 = arith.mulf %148, %149 : vector<8x8xf32>
    %cst_48 = arith.constant dense<0xFF800000> : vector<8xf32>
    %151 = vector.multi_reduction <maximumf>, %150, %cst_48 [1] : vector<8x8xf32> to vector<8xf32>
    %152 = vector.shape_cast %151 : vector<8xf32> to vector<8x1xf32>
    %153 = vector.broadcast %152 : vector<8x1xf32> to vector<8x8xf32>
    %154 = arith.subf %150, %153 : vector<8x8xf32>
    %155 = math.exp %154 : vector<8x8xf32>
    %cst_49 = arith.constant dense<0.000000e+00> : vector<8xf32>
    %156 = vector.multi_reduction <add>, %155, %cst_49 [1] : vector<8x8xf32> to vector<8xf32>
    %157 = vector.shape_cast %156 : vector<8xf32> to vector<8x1xf32>
    %158 = tpu.reciprocal %157 {approx = true} : vector<8x1xf32> -> vector<8x1xf32>
    %159 = vector.broadcast %158 : vector<8x1xf32> to vector<8x8xf32>
    %160 = arith.mulf %155, %159 : vector<8x8xf32>
    %161 = arith.truncf %160 : vector<8x8xf32> to vector<8x8xbf16>
    %cst_50 = arith.constant dense<0.000000e+00> : vector<8x4xf32>
    %162 = tpu.matmul %161, %147, %cst_50 {dimension_numbers = #tpu.dot_dimension_numbers<[1], [0], [0], [1], [0, 0, 1, 1], [], []>} : vector<8x8xbf16>, vector<8x4xbf16>, vector<8x4xf32> -> vector<8x4xf32>
    %c0_51 = arith.constant 0 : index
    %c20 = arith.constant 20 : index
    %163 = vector.load %arg19[%c0_51, %c20] : memref<16x32xf32, #tpu.memory_space<vmem>>, vector<8x4xf32>
    tpu.vector_store %arg19[%c0_51, %c20], %162 {strides = array<i32>} : memref<16x32xf32, #tpu.memory_space<vmem>>, vector<8x4xf32>,
    %164 = vector.extract_strided_slice %31 {offsets = [0, 24], sizes = [8, 4], strides = [1, 1]} : vector<16x96xf32> to vector<8x4xf32>
    %165 = arith.truncf %164 : vector<8x4xf32> to vector<8x4xbf16>
    %166 = vector.extract_strided_slice %31 {offsets = [0, 56], sizes = [8, 4], strides = [1, 1]} : vector<16x96xf32> to vector<8x4xf32>
    %167 = arith.truncf %166 : vector<8x4xf32> to vector<8x4xbf16>
    %168 = vector.extract_strided_slice %31 {offsets = [0, 88], sizes = [8, 4], strides = [1, 1]} : vector<16x96xf32> to vector<8x4xf32>
    %169 = arith.truncf %168 : vector<8x4xf32> to vector<8x4xbf16>
    %cst_52 = arith.constant dense<0.000000e+00> : vector<8x8xf32>
    %170 = tpu.matmul %165, %167, %cst_52 {dimension_numbers = #tpu.dot_dimension_numbers<[1], [1], [0], [0], [0, 0, 1, 0], [], []>} : vector<8x4xbf16>, vector<8x4xbf16>, vector<8x8xf32> -> vector<8x8xf32>
    %cst_53 = arith.constant 5.000000e-01 : f32
    %171 = vector.broadcast %cst_53 : f32 to vector<8x8xf32>
    %172 = arith.mulf %170, %171 : vector<8x8xf32>
    %cst_54 = arith.constant dense<0xFF800000> : vector<8xf32>
    %173 = vector.multi_reduction <maximumf>, %172, %cst_54 [1] : vector<8x8xf32> to vector<8xf32>
    %174 = vector.shape_cast %173 : vector<8xf32> to vector<8x1xf32>
    %175 = vector.broadcast %174 : vector<8x1xf32> to vector<8x8xf32>
    %176 = arith.subf %172, %175 : vector<8x8xf32>
    %177 = math.exp %176 : vector<8x8xf32>
    %cst_55 = arith.constant dense<0.000000e+00> : vector<8xf32>
    %178 = vector.multi_reduction <add>, %177, %cst_55 [1] : vector<8x8xf32> to vector<8xf32>
    %179 = vector.shape_cast %178 : vector<8xf32> to vector<8x1xf32>
    %180 = tpu.reciprocal %179 {approx = true} : vector<8x1xf32> -> vector<8x1xf32>
    %181 = vector.broadcast %180 : vector<8x1xf32> to vector<8x8xf32>
    %182 = arith.mulf %177, %181 : vector<8x8xf32>
    %183 = arith.truncf %182 : vector<8x8xf32> to vector<8x8xbf16>
    %cst_56 = arith.constant dense<0.000000e+00> : vector<8x4xf32>
    %184 = tpu.matmul %183, %169, %cst_56 {dimension_numbers = #tpu.dot_dimension_numbers<[1], [0], [0], [1], [0, 0, 1, 1], [], []>} : vector<8x8xbf16>, vector<8x4xbf16>, vector<8x4xf32> -> vector<8x4xf32>
    %c0_57 = arith.constant 0 : index
    %c24 = arith.constant 24 : index
    %185 = vector.load %arg19[%c0_57, %c24] : memref<16x32xf32, #tpu.memory_space<vmem>>, vector<8x4xf32>
    tpu.vector_store %arg19[%c0_57, %c24], %184 {strides = array<i32>} : memref<16x32xf32, #tpu.memory_space<vmem>>, vector<8x4xf32>,
    %186 = vector.extract_strided_slice %31 {offsets = [0, 28], sizes = [8, 4], strides = [1, 1]} : vector<16x96xf32> to vector<8x4xf32>
    %187 = arith.truncf %186 : vector<8x4xf32> to vector<8x4xbf16>
    %188 = vector.extract_strided_slice %31 {offsets = [0, 60], sizes = [8, 4], strides = [1, 1]} : vector<16x96xf32> to vector<8x4xf32>
    %189 = arith.truncf %188 : vector<8x4xf32> to vector<8x4xbf16>
    %190 = vector.extract_strided_slice %31 {offsets = [0, 92], sizes = [8, 4], strides = [1, 1]} : vector<16x96xf32> to vector<8x4xf32>
    %191 = arith.truncf %190 : vector<8x4xf32> to vector<8x4xbf16>
    %cst_58 = arith.constant dense<0.000000e+00> : vector<8x8xf32>
    %192 = tpu.matmul %187, %189, %cst_58 {dimension_numbers = #tpu.dot_dimension_numbers<[1], [1], [0], [0], [0, 0, 1, 0], [], []>} : vector<8x4xbf16>, vector<8x4xbf16>, vector<8x8xf32> -> vector<8x8xf32>
    %cst_59 = arith.constant 5.000000e-01 : f32
    %193 = vector.broadcast %cst_59 : f32 to vector<8x8xf32>
    %194 = arith.mulf %192, %193 : vector<8x8xf32>
    %cst_60 = arith.constant dense<0xFF800000> : vector<8xf32>
    %195 = vector.multi_reduction <maximumf>, %194, %cst_60 [1] : vector<8x8xf32> to vector<8xf32>
    %196 = vector.shape_cast %195 : vector<8xf32> to vector<8x1xf32>
    %197 = vector.broadcast %196 : vector<8x1xf32> to vector<8x8xf32>
    %198 = arith.subf %194, %197 : vector<8x8xf32>
    %199 = math.exp %198 : vector<8x8xf32>
    %cst_61 = arith.constant dense<0.000000e+00> : vector<8xf32>
    %200 = vector.multi_reduction <add>, %199, %cst_61 [1] : vector<8x8xf32> to vector<8xf32>
    %201 = vector.shape_cast %200 : vector<8xf32> to vector<8x1xf32>
    %202 = tpu.reciprocal %201 {approx = true} : vector<8x1xf32> -> vector<8x1xf32>
    %203 = vector.broadcast %202 : vector<8x1xf32> to vector<8x8xf32>
    %204 = arith.mulf %199, %203 : vector<8x8xf32>
    %205 = arith.truncf %204 : vector<8x8xf32> to vector<8x8xbf16>
    %cst_62 = arith.constant dense<0.000000e+00> : vector<8x4xf32>
    %206 = tpu.matmul %205, %191, %cst_62 {dimension_numbers = #tpu.dot_dimension_numbers<[1], [0], [0], [1], [0, 0, 1, 1], [], []>} : vector<8x8xbf16>, vector<8x4xbf16>, vector<8x4xf32> -> vector<8x4xf32>
    %c0_63 = arith.constant 0 : index
    %c28 = arith.constant 28 : index
    %207 = vector.load %arg19[%c0_63, %c28] : memref<16x32xf32, #tpu.memory_space<vmem>>, vector<8x4xf32>
    tpu.vector_store %arg19[%c0_63, %c28], %206 {strides = array<i32>} : memref<16x32xf32, #tpu.memory_space<vmem>>, vector<8x4xf32>,
    %208 = vector.extract_strided_slice %31 {offsets = [8, 0], sizes = [8, 4], strides = [1, 1]} : vector<16x96xf32> to vector<8x4xf32>
    %209 = arith.truncf %208 : vector<8x4xf32> to vector<8x4xbf16>
    %210 = vector.extract_strided_slice %31 {offsets = [8, 32], sizes = [8, 4], strides = [1, 1]} : vector<16x96xf32> to vector<8x4xf32>
    %211 = arith.truncf %210 : vector<8x4xf32> to vector<8x4xbf16>
    %212 = vector.extract_strided_slice %31 {offsets = [8, 64], sizes = [8, 4], strides = [1, 1]} : vector<16x96xf32> to vector<8x4xf32>
    %213 = arith.truncf %212 : vector<8x4xf32> to vector<8x4xbf16>
    %cst_64 = arith.constant dense<0.000000e+00> : vector<8x8xf32>
    %214 = tpu.matmul %209, %211, %cst_64 {dimension_numbers = #tpu.dot_dimension_numbers<[1], [1], [0], [0], [0, 0, 1, 0], [], []>} : vector<8x4xbf16>, vector<8x4xbf16>, vector<8x8xf32> -> vector<8x8xf32>
    %cst_65 = arith.constant 5.000000e-01 : f32
    %215 = vector.broadcast %cst_65 : f32 to vector<8x8xf32>
    %216 = arith.mulf %214, %215 : vector<8x8xf32>
    %cst_66 = arith.constant dense<0xFF800000> : vector<8xf32>
    %217 = vector.multi_reduction <maximumf>, %216, %cst_66 [1] : vector<8x8xf32> to vector<8xf32>
    %218 = vector.shape_cast %217 : vector<8xf32> to vector<8x1xf32>
    %219 = vector.broadcast %218 : vector<8x1xf32> to vector<8x8xf32>
    %220 = arith.subf %216, %219 : vector<8x8xf32>
    %221 = math.exp %220 : vector<8x8xf32>
    %cst_67 = arith.constant dense<0.000000e+00> : vector<8xf32>
    %222 = vector.multi_reduction <add>, %221, %cst_67 [1] : vector<8x8xf32> to vector<8xf32>
    %223 = vector.shape_cast %222 : vector<8xf32> to vector<8x1xf32>
    %224 = tpu.reciprocal %223 {approx = true} : vector<8x1xf32> -> vector<8x1xf32>
    %225 = vector.broadcast %224 : vector<8x1xf32> to vector<8x8xf32>
    %226 = arith.mulf %221, %225 : vector<8x8xf32>
    %227 = arith.truncf %226 : vector<8x8xf32> to vector<8x8xbf16>
    %cst_68 = arith.constant dense<0.000000e+00> : vector<8x4xf32>
    %228 = tpu.matmul %227, %213, %cst_68 {dimension_numbers = #tpu.dot_dimension_numbers<[1], [0], [0], [1], [0, 0, 1, 1], [], []>} : vector<8x8xbf16>, vector<8x4xbf16>, vector<8x4xf32> -> vector<8x4xf32>
    %c8_69 = arith.constant 8 : index
    %c0_70 = arith.constant 0 : index
    %229 = vector.load %arg19[%c8_69, %c0_70] : memref<16x32xf32, #tpu.memory_space<vmem>>, vector<8x4xf32>
    tpu.vector_store %arg19[%c8_69, %c0_70], %228 {strides = array<i32>} : memref<16x32xf32, #tpu.memory_space<vmem>>, vector<8x4xf32>,
    %230 = vector.extract_strided_slice %31 {offsets = [8, 4], sizes = [8, 4], strides = [1, 1]} : vector<16x96xf32> to vector<8x4xf32>
    %231 = arith.truncf %230 : vector<8x4xf32> to vector<8x4xbf16>
    %232 = vector.extract_strided_slice %31 {offsets = [8, 36], sizes = [8, 4], strides = [1, 1]} : vector<16x96xf32> to vector<8x4xf32>
    %233 = arith.truncf %232 : vector<8x4xf32> to vector<8x4xbf16>
    %234 = vector.extract_strided_slice %31 {offsets = [8, 68], sizes = [8, 4], strides = [1, 1]} : vector<16x96xf32> to vector<8x4xf32>
    %235 = arith.truncf %234 : vector<8x4xf32> to vector<8x4xbf16>
    %cst_71 = arith.constant dense<0.000000e+00> : vector<8x8xf32>
    %236 = tpu.matmul %231, %233, %cst_71 {dimension_numbers = #tpu.dot_dimension_numbers<[1], [1], [0], [0], [0, 0, 1, 0], [], []>} : vector<8x4xbf16>, vector<8x4xbf16>, vector<8x8xf32> -> vector<8x8xf32>
    %cst_72 = arith.constant 5.000000e-01 : f32
    %237 = vector.broadcast %cst_72 : f32 to vector<8x8xf32>
    %238 = arith.mulf %236, %237 : vector<8x8xf32>
    %cst_73 = arith.constant dense<0xFF800000> : vector<8xf32>
    %239 = vector.multi_reduction <maximumf>, %238, %cst_73 [1] : vector<8x8xf32> to vector<8xf32>
    %240 = vector.shape_cast %239 : vector<8xf32> to vector<8x1xf32>
    %241 = vector.broadcast %240 : vector<8x1xf32> to vector<8x8xf32>
    %242 = arith.subf %238, %241 : vector<8x8xf32>
    %243 = math.exp %242 : vector<8x8xf32>
    %cst_74 = arith.constant dense<0.000000e+00> : vector<8xf32>
    %244 = vector.multi_reduction <add>, %243, %cst_74 [1] : vector<8x8xf32> to vector<8xf32>
    %245 = vector.shape_cast %244 : vector<8xf32> to vector<8x1xf32>
    %246 = tpu.reciprocal %245 {approx = true} : vector<8x1xf32> -> vector<8x1xf32>
    %247 = vector.broadcast %246 : vector<8x1xf32> to vector<8x8xf32>
    %248 = arith.mulf %243, %247 : vector<8x8xf32>
    %249 = arith.truncf %248 : vector<8x8xf32> to vector<8x8xbf16>
    %cst_75 = arith.constant dense<0.000000e+00> : vector<8x4xf32>
    %250 = tpu.matmul %249, %235, %cst_75 {dimension_numbers = #tpu.dot_dimension_numbers<[1], [0], [0], [1], [0, 0, 1, 1], [], []>} : vector<8x8xbf16>, vector<8x4xbf16>, vector<8x4xf32> -> vector<8x4xf32>
    %c8_76 = arith.constant 8 : index
    %c4_77 = arith.constant 4 : index
    %251 = vector.load %arg19[%c8_76, %c4_77] : memref<16x32xf32, #tpu.memory_space<vmem>>, vector<8x4xf32>
    tpu.vector_store %arg19[%c8_76, %c4_77], %250 {strides = array<i32>} : memref<16x32xf32, #tpu.memory_space<vmem>>, vector<8x4xf32>,
    %252 = vector.extract_strided_slice %31 {offsets = [8, 8], sizes = [8, 4], strides = [1, 1]} : vector<16x96xf32> to vector<8x4xf32>
    %253 = arith.truncf %252 : vector<8x4xf32> to vector<8x4xbf16>
    %254 = vector.extract_strided_slice %31 {offsets = [8, 40], sizes = [8, 4], strides = [1, 1]} : vector<16x96xf32> to vector<8x4xf32>
    %255 = arith.truncf %254 : vector<8x4xf32> to vector<8x4xbf16>
    %256 = vector.extract_strided_slice %31 {offsets = [8, 72], sizes = [8, 4], strides = [1, 1]} : vector<16x96xf32> to vector<8x4xf32>
    %257 = arith.truncf %256 : vector<8x4xf32> to vector<8x4xbf16>
    %cst_78 = arith.constant dense<0.000000e+00> : vector<8x8xf32>
    %258 = tpu.matmul %253, %255, %cst_78 {dimension_numbers = #tpu.dot_dimension_numbers<[1], [1], [0], [0], [0, 0, 1, 0], [], []>} : vector<8x4xbf16>, vector<8x4xbf16>, vector<8x8xf32> -> vector<8x8xf32>
    %cst_79 = arith.constant 5.000000e-01 : f32
    %259 = vector.broadcast %cst_79 : f32 to vector<8x8xf32>
    %260 = arith.mulf %258, %259 : vector<8x8xf32>
    %cst_80 = arith.constant dense<0xFF800000> : vector<8xf32>
    %261 = vector.multi_reduction <maximumf>, %260, %cst_80 [1] : vector<8x8xf32> to vector<8xf32>
    %262 = vector.shape_cast %261 : vector<8xf32> to vector<8x1xf32>
    %263 = vector.broadcast %262 : vector<8x1xf32> to vector<8x8xf32>
    %264 = arith.subf %260, %263 : vector<8x8xf32>
    %265 = math.exp %264 : vector<8x8xf32>
    %cst_81 = arith.constant dense<0.000000e+00> : vector<8xf32>
    %266 = vector.multi_reduction <add>, %265, %cst_81 [1] : vector<8x8xf32> to vector<8xf32>
    %267 = vector.shape_cast %266 : vector<8xf32> to vector<8x1xf32>
    %268 = tpu.reciprocal %267 {approx = true} : vector<8x1xf32> -> vector<8x1xf32>
    %269 = vector.broadcast %268 : vector<8x1xf32> to vector<8x8xf32>
    %270 = arith.mulf %265, %269 : vector<8x8xf32>
    %271 = arith.truncf %270 : vector<8x8xf32> to vector<8x8xbf16>
    %cst_82 = arith.constant dense<0.000000e+00> : vector<8x4xf32>
    %272 = tpu.matmul %271, %257, %cst_82 {dimension_numbers = #tpu.dot_dimension_numbers<[1], [0], [0], [1], [0, 0, 1, 1], [], []>} : vector<8x8xbf16>, vector<8x4xbf16>, vector<8x4xf32> -> vector<8x4xf32>
    %c8_83 = arith.constant 8 : index
    %c8_84 = arith.constant 8 : index
    %273 = vector.load %arg19[%c8_83, %c8_84] : memref<16x32xf32, #tpu.memory_space<vmem>>, vector<8x4xf32>
    tpu.vector_store %arg19[%c8_83, %c8_84], %272 {strides = array<i32>} : memref<16x32xf32, #tpu.memory_space<vmem>>, vector<8x4xf32>,
    %274 = vector.extract_strided_slice %31 {offsets = [8, 12], sizes = [8, 4], strides = [1, 1]} : vector<16x96xf32> to vector<8x4xf32>
    %275 = arith.truncf %274 : vector<8x4xf32> to vector<8x4xbf16>
    %276 = vector.extract_strided_slice %31 {offsets = [8, 44], sizes = [8, 4], strides = [1, 1]} : vector<16x96xf32> to vector<8x4xf32>
    %277 = arith.truncf %276 : vector<8x4xf32> to vector<8x4xbf16>
    %278 = vector.extract_strided_slice %31 {offsets = [8, 76], sizes = [8, 4], strides = [1, 1]} : vector<16x96xf32> to vector<8x4xf32>
    %279 = arith.truncf %278 : vector<8x4xf32> to vector<8x4xbf16>
    %cst_85 = arith.constant dense<0.000000e+00> : vector<8x8xf32>
    %280 = tpu.matmul %275, %277, %cst_85 {dimension_numbers = #tpu.dot_dimension_numbers<[1], [1], [0], [0], [0, 0, 1, 0], [], []>} : vector<8x4xbf16>, vector<8x4xbf16>, vector<8x8xf32> -> vector<8x8xf32>
    %cst_86 = arith.constant 5.000000e-01 : f32
    %281 = vector.broadcast %cst_86 : f32 to vector<8x8xf32>
    %282 = arith.mulf %280, %281 : vector<8x8xf32>
    %cst_87 = arith.constant dense<0xFF800000> : vector<8xf32>
    %283 = vector.multi_reduction <maximumf>, %282, %cst_87 [1] : vector<8x8xf32> to vector<8xf32>
    %284 = vector.shape_cast %283 : vector<8xf32> to vector<8x1xf32>
    %285 = vector.broadcast %284 : vector<8x1xf32> to vector<8x8xf32>
    %286 = arith.subf %282, %285 : vector<8x8xf32>
    %287 = math.exp %286 : vector<8x8xf32>
    %cst_88 = arith.constant dense<0.000000e+00> : vector<8xf32>
    %288 = vector.multi_reduction <add>, %287, %cst_88 [1] : vector<8x8xf32> to vector<8xf32>
    %289 = vector.shape_cast %288 : vector<8xf32> to vector<8x1xf32>
    %290 = tpu.reciprocal %289 {approx = true} : vector<8x1xf32> -> vector<8x1xf32>
    %291 = vector.broadcast %290 : vector<8x1xf32> to vector<8x8xf32>
    %292 = arith.mulf %287, %291 : vector<8x8xf32>
    %293 = arith.truncf %292 : vector<8x8xf32> to vector<8x8xbf16>
    %cst_89 = arith.constant dense<0.000000e+00> : vector<8x4xf32>
    %294 = tpu.matmul %293, %279, %cst_89 {dimension_numbers = #tpu.dot_dimension_numbers<[1], [0], [0], [1], [0, 0, 1, 1], [], []>} : vector<8x8xbf16>, vector<8x4xbf16>, vector<8x4xf32> -> vector<8x4xf32>
    %c8_90 = arith.constant 8 : index
    %c12_91 = arith.constant 12 : index
    %295 = vector.load %arg19[%c8_90, %c12_91] : memref<16x32xf32, #tpu.memory_space<vmem>>, vector<8x4xf32>
    tpu.vector_store %arg19[%c8_90, %c12_91], %294 {strides = array<i32>} : memref<16x32xf32, #tpu.memory_space<vmem>>, vector<8x4xf32>,
    %296 = vector.extract_strided_slice %31 {offsets = [8, 16], sizes = [8, 4], strides = [1, 1]} : vector<16x96xf32> to vector<8x4xf32>
    %297 = arith.truncf %296 : vector<8x4xf32> to vector<8x4xbf16>
    %298 = vector.extract_strided_slice %31 {offsets = [8, 48], sizes = [8, 4], strides = [1, 1]} : vector<16x96xf32> to vector<8x4xf32>
    %299 = arith.truncf %298 : vector<8x4xf32> to vector<8x4xbf16>
    %300 = vector.extract_strided_slice %31 {offsets = [8, 80], sizes = [8, 4], strides = [1, 1]} : vector<16x96xf32> to vector<8x4xf32>
    %301 = arith.truncf %300 : vector<8x4xf32> to vector<8x4xbf16>
    %cst_92 = arith.constant dense<0.000000e+00> : vector<8x8xf32>
    %302 = tpu.matmul %297, %299, %cst_92 {dimension_numbers = #tpu.dot_dimension_numbers<[1], [1], [0], [0], [0, 0, 1, 0], [], []>} : vector<8x4xbf16>, vector<8x4xbf16>, vector<8x8xf32> -> vector<8x8xf32>
    %cst_93 = arith.constant 5.000000e-01 : f32
    %303 = vector.broadcast %cst_93 : f32 to vector<8x8xf32>
    %304 = arith.mulf %302, %303 : vector<8x8xf32>
    %cst_94 = arith.constant dense<0xFF800000> : vector<8xf32>
    %305 = vector.multi_reduction <maximumf>, %304, %cst_94 [1] : vector<8x8xf32> to vector<8xf32>
    %306 = vector.shape_cast %305 : vector<8xf32> to vector<8x1xf32>
    %307 = vector.broadcast %306 : vector<8x1xf32> to vector<8x8xf32>
    %308 = arith.subf %304, %307 : vector<8x8xf32>
    %309 = math.exp %308 : vector<8x8xf32>
    %cst_95 = arith.constant dense<0.000000e+00> : vector<8xf32>
    %310 = vector.multi_reduction <add>, %309, %cst_95 [1] : vector<8x8xf32> to vector<8xf32>
    %311 = vector.shape_cast %310 : vector<8xf32> to vector<8x1xf32>
    %312 = tpu.reciprocal %311 {approx = true} : vector<8x1xf32> -> vector<8x1xf32>
    %313 = vector.broadcast %312 : vector<8x1xf32> to vector<8x8xf32>
    %314 = arith.mulf %309, %313 : vector<8x8xf32>
    %315 = arith.truncf %314 : vector<8x8xf32> to vector<8x8xbf16>
    %cst_96 = arith.constant dense<0.000000e+00> : vector<8x4xf32>
    %316 = tpu.matmul %315, %301, %cst_96 {dimension_numbers = #tpu.dot_dimension_numbers<[1], [0], [0], [1], [0, 0, 1, 1], [], []>} : vector<8x8xbf16>, vector<8x4xbf16>, vector<8x4xf32> -> vector<8x4xf32>
    %c8_97 = arith.constant 8 : index
    %c16_98 = arith.constant 16 : index
    %317 = vector.load %arg19[%c8_97, %c16_98] : memref<16x32xf32, #tpu.memory_space<vmem>>, vector<8x4xf32>
    tpu.vector_store %arg19[%c8_97, %c16_98], %316 {strides = array<i32>} : memref<16x32xf32, #tpu.memory_space<vmem>>, vector<8x4xf32>,
    %318 = vector.extract_strided_slice %31 {offsets = [8, 20], sizes = [8, 4], strides = [1, 1]} : vector<16x96xf32> to vector<8x4xf32>
    %319 = arith.truncf %318 : vector<8x4xf32> to vector<8x4xbf16>
    %320 = vector.extract_strided_slice %31 {offsets = [8, 52], sizes = [8, 4], strides = [1, 1]} : vector<16x96xf32> to vector<8x4xf32>
    %321 = arith.truncf %320 : vector<8x4xf32> to vector<8x4xbf16>
    %322 = vector.extract_strided_slice %31 {offsets = [8, 84], sizes = [8, 4], strides = [1, 1]} : vector<16x96xf32> to vector<8x4xf32>
    %323 = arith.truncf %322 : vector<8x4xf32> to vector<8x4xbf16>
    %cst_99 = arith.constant dense<0.000000e+00> : vector<8x8xf32>
    %324 = tpu.matmul %319, %321, %cst_99 {dimension_numbers = #tpu.dot_dimension_numbers<[1], [1], [0], [0], [0, 0, 1, 0], [], []>} : vector<8x4xbf16>, vector<8x4xbf16>, vector<8x8xf32> -> vector<8x8xf32>
    %cst_100 = arith.constant 5.000000e-01 : f32
    %325 = vector.broadcast %cst_100 : f32 to vector<8x8xf32>
    %326 = arith.mulf %324, %325 : vector<8x8xf32>
    %cst_101 = arith.constant dense<0xFF800000> : vector<8xf32>
    %327 = vector.multi_reduction <maximumf>, %326, %cst_101 [1] : vector<8x8xf32> to vector<8xf32>
    %328 = vector.shape_cast %327 : vector<8xf32> to vector<8x1xf32>
    %329 = vector.broadcast %328 : vector<8x1xf32> to vector<8x8xf32>
    %330 = arith.subf %326, %329 : vector<8x8xf32>
    %331 = math.exp %330 : vector<8x8xf32>
    %cst_102 = arith.constant dense<0.000000e+00> : vector<8xf32>
    %332 = vector.multi_reduction <add>, %331, %cst_102 [1] : vector<8x8xf32> to vector<8xf32>
    %333 = vector.shape_cast %332 : vector<8xf32> to vector<8x1xf32>
    %334 = tpu.reciprocal %333 {approx = true} : vector<8x1xf32> -> vector<8x1xf32>
    %335 = vector.broadcast %334 : vector<8x1xf32> to vector<8x8xf32>
    %336 = arith.mulf %331, %335 : vector<8x8xf32>
    %337 = arith.truncf %336 : vector<8x8xf32> to vector<8x8xbf16>
    %cst_103 = arith.constant dense<0.000000e+00> : vector<8x4xf32>
    %338 = tpu.matmul %337, %323, %cst_103 {dimension_numbers = #tpu.dot_dimension_numbers<[1], [0], [0], [1], [0, 0, 1, 1], [], []>} : vector<8x8xbf16>, vector<8x4xbf16>, vector<8x4xf32> -> vector<8x4xf32>
    %c8_104 = arith.constant 8 : index
    %c20_105 = arith.constant 20 : index
    %339 = vector.load %arg19[%c8_104, %c20_105] : memref<16x32xf32, #tpu.memory_space<vmem>>, vector<8x4xf32>
    tpu.vector_store %arg19[%c8_104, %c20_105], %338 {strides = array<i32>} : memref<16x32xf32, #tpu.memory_space<vmem>>, vector<8x4xf32>,
    %340 = vector.extract_strided_slice %31 {offsets = [8, 24], sizes = [8, 4], strides = [1, 1]} : vector<16x96xf32> to vector<8x4xf32>
    %341 = arith.truncf %340 : vector<8x4xf32> to vector<8x4xbf16>
    %342 = vector.extract_strided_slice %31 {offsets = [8, 56], sizes = [8, 4], strides = [1, 1]} : vector<16x96xf32> to vector<8x4xf32>
    %343 = arith.truncf %342 : vector<8x4xf32> to vector<8x4xbf16>
    %344 = vector.extract_strided_slice %31 {offsets = [8, 88], sizes = [8, 4], strides = [1, 1]} : vector<16x96xf32> to vector<8x4xf32>
    %345 = arith.truncf %344 : vector<8x4xf32> to vector<8x4xbf16>
    %cst_106 = arith.constant dense<0.000000e+00> : vector<8x8xf32>
    %346 = tpu.matmul %341, %343, %cst_106 {dimension_numbers = #tpu.dot_dimension_numbers<[1], [1], [0], [0], [0, 0, 1, 0], [], []>} : vector<8x4xbf16>, vector<8x4xbf16>, vector<8x8xf32> -> vector<8x8xf32>
    %cst_107 = arith.constant 5.000000e-01 : f32
    %347 = vector.broadcast %cst_107 : f32 to vector<8x8xf32>
    %348 = arith.mulf %346, %347 : vector<8x8xf32>
    %cst_108 = arith.constant dense<0xFF800000> : vector<8xf32>
    %349 = vector.multi_reduction <maximumf>, %348, %cst_108 [1] : vector<8x8xf32> to vector<8xf32>
    %350 = vector.shape_cast %349 : vector<8xf32> to vector<8x1xf32>
    %351 = vector.broadcast %350 : vector<8x1xf32> to vector<8x8xf32>
    %352 = arith.subf %348, %351 : vector<8x8xf32>
    %353 = math.exp %352 : vector<8x8xf32>
    %cst_109 = arith.constant dense<0.000000e+00> : vector<8xf32>
    %354 = vector.multi_reduction <add>, %353, %cst_109 [1] : vector<8x8xf32> to vector<8xf32>
    %355 = vector.shape_cast %354 : vector<8xf32> to vector<8x1xf32>
    %356 = tpu.reciprocal %355 {approx = true} : vector<8x1xf32> -> vector<8x1xf32>
    %357 = vector.broadcast %356 : vector<8x1xf32> to vector<8x8xf32>
    %358 = arith.mulf %353, %357 : vector<8x8xf32>
    %359 = arith.truncf %358 : vector<8x8xf32> to vector<8x8xbf16>
    %cst_110 = arith.constant dense<0.000000e+00> : vector<8x4xf32>
    %360 = tpu.matmul %359, %345, %cst_110 {dimension_numbers = #tpu.dot_dimension_numbers<[1], [0], [0], [1], [0, 0, 1, 1], [], []>} : vector<8x8xbf16>, vector<8x4xbf16>, vector<8x4xf32> -> vector<8x4xf32>
    %c8_111 = arith.constant 8 : index
    %c24_112 = arith.constant 24 : index
    %361 = vector.load %arg19[%c8_111, %c24_112] : memref<16x32xf32, #tpu.memory_space<vmem>>, vector<8x4xf32>
    tpu.vector_store %arg19[%c8_111, %c24_112], %360 {strides = array<i32>} : memref<16x32xf32, #tpu.memory_space<vmem>>, vector<8x4xf32>,
    %362 = vector.extract_strided_slice %31 {offsets = [8, 28], sizes = [8, 4], strides = [1, 1]} : vector<16x96xf32> to vector<8x4xf32>
    %363 = arith.truncf %362 : vector<8x4xf32> to vector<8x4xbf16>
    %364 = vector.extract_strided_slice %31 {offsets = [8, 60], sizes = [8, 4], strides = [1, 1]} : vector<16x96xf32> to vector<8x4xf32>
    %365 = arith.truncf %364 : vector<8x4xf32> to vector<8x4xbf16>
    %366 = vector.extract_strided_slice %31 {offsets = [8, 92], sizes = [8, 4], strides = [1, 1]} : vector<16x96xf32> to vector<8x4xf32>
    %367 = arith.truncf %366 : vector<8x4xf32> to vector<8x4xbf16>
    %cst_113 = arith.constant dense<0.000000e+00> : vector<8x8xf32>
    %368 = tpu.matmul %363, %365, %cst_113 {dimension_numbers = #tpu.dot_dimension_numbers<[1], [1], [0], [0], [0, 0, 1, 0], [], []>} : vector<8x4xbf16>, vector<8x4xbf16>, vector<8x8xf32> -> vector<8x8xf32>
    %cst_114 = arith.constant 5.000000e-01 : f32
    %369 = vector.broadcast %cst_114 : f32 to vector<8x8xf32>
    %370 = arith.mulf %368, %369 : vector<8x8xf32>
    %cst_115 = arith.constant dense<0xFF800000> : vector<8xf32>
    %371 = vector.multi_reduction <maximumf>, %370, %cst_115 [1] : vector<8x8xf32> to vector<8xf32>
    %372 = vector.shape_cast %371 : vector<8xf32> to vector<8x1xf32>
    %373 = vector.broadcast %372 : vector<8x1xf32> to vector<8x8xf32>
    %374 = arith.subf %370, %373 : vector<8x8xf32>
    %375 = math.exp %374 : vector<8x8xf32>
    %cst_116 = arith.constant dense<0.000000e+00> : vector<8xf32>
    %376 = vector.multi_reduction <add>, %375, %cst_116 [1] : vector<8x8xf32> to vector<8xf32>
    %377 = vector.shape_cast %376 : vector<8xf32> to vector<8x1xf32>
    %378 = tpu.reciprocal %377 {approx = true} : vector<8x1xf32> -> vector<8x1xf32>
    %379 = vector.broadcast %378 : vector<8x1xf32> to vector<8x8xf32>
    %380 = arith.mulf %375, %379 : vector<8x8xf32>
    %381 = arith.truncf %380 : vector<8x8xf32> to vector<8x8xbf16>
    %cst_117 = arith.constant dense<0.000000e+00> : vector<8x4xf32>
    %382 = tpu.matmul %381, %367, %cst_117 {dimension_numbers = #tpu.dot_dimension_numbers<[1], [0], [0], [1], [0, 0, 1, 1], [], []>} : vector<8x8xbf16>, vector<8x4xbf16>, vector<8x4xf32> -> vector<8x4xf32>
    %c8_118 = arith.constant 8 : index
    %c28_119 = arith.constant 28 : index
    %383 = vector.load %arg19[%c8_118, %c28_119] : memref<16x32xf32, #tpu.memory_space<vmem>>, vector<8x4xf32>
    tpu.vector_store %arg19[%c8_118, %c28_119], %382 {strides = array<i32>} : memref<16x32xf32, #tpu.memory_space<vmem>>, vector<8x4xf32>,
    %c0_120 = arith.constant 0 : index
    %c0_121 = arith.constant 0 : index
    %384 = vector.load %arg19[%c0_120, %c0_121] : memref<16x32xf32, #tpu.memory_space<vmem>>, vector<16x32xf32>
    %385 = arith.truncf %384 : vector<16x32xf32> to vector<16x32xbf16>
    %c0_122 = arith.constant 0 : index
    %c0_123 = arith.constant 0 : index
    %386 = vector.load %arg6[%c0_122, %c0_123] : memref<32x32xbf16, #tpu.memory_space<vmem>>, vector<32x32xbf16>
    %cst_124 = arith.constant dense<0.000000e+00> : vector<16x32xf32>
    %387 = tpu.matmul %385, %386, %cst_124 {dimension_numbers = #tpu.dot_dimension_numbers<[1], [0], [0], [1], [0, 0, 1, 1], [], []>} : vector<16x32xbf16>, vector<32x32xbf16>, vector<16x32xf32> -> vector<16x32xf32>
    %c0_125 = arith.constant 0 : index
    %c0_126 = arith.constant 0 : index
    %388 = vector.load %arg7[%c0_125, %c0_126] : memref<1x32xf32, #tpu.memory_space<vmem>>, vector<1x32xf32>
    %389 = vector.broadcast %388 : vector<1x32xf32> to vector<16x32xf32>
    %390 = arith.addf %387, %389 : vector<16x32xf32>
    %c0_127 = arith.constant 0 : index
    %c0_128 = arith.constant 0 : index
    %391 = vector.load %arg8[%c0_127, %c0_128] : memref<1x32xf32, #tpu.memory_space<vmem>>, vector<1x32xf32>
    %c0_129 = arith.constant 0 : index
    %c0_130 = arith.constant 0 : index
    %392 = vector.load %arg9[%c0_129, %c0_130] : memref<1x32xf32, #tpu.memory_space<vmem>>, vector<1x32xf32>
    %cst_131 = arith.constant dense<0.000000e+00> : vector<16xf32>
    %393 = vector.multi_reduction <add>, %390, %cst_131 [1] : vector<16x32xf32> to vector<16xf32>
    %394 = vector.shape_cast %393 : vector<16xf32> to vector<16x1xf32>
    %cst_132 = arith.constant 3.200000e+01 : f32
    %395 = vector.broadcast %cst_132 : f32 to vector<16x1xf32>
    %396 = arith.divf %394, %395 : vector<16x1xf32>
    %397 = vector.broadcast %396 : vector<16x1xf32> to vector<16x32xf32>
    %398 = arith.subf %390, %397 : vector<16x32xf32>
    %399 = arith.mulf %398, %398 : vector<16x32xf32>
    %cst_133 = arith.constant dense<0.000000e+00> : vector<16xf32>
    %400 = vector.multi_reduction <add>, %399, %cst_133 [1] : vector<16x32xf32> to vector<16xf32>
    %401 = vector.shape_cast %400 : vector<16xf32> to vector<16x1xf32>
    %cst_134 = arith.constant 3.200000e+01 : f32
    %402 = vector.broadcast %cst_134 : f32 to vector<16x1xf32>
    %403 = arith.divf %401, %402 : vector<16x1xf32>
    %404 = vector.broadcast %396 : vector<16x1xf32> to vector<16x32xf32>
    %405 = arith.subf %390, %404 : vector<16x32xf32>
    %cst_135 = arith.constant 9.99999974E-6 : f32
    %406 = vector.broadcast %cst_135 : f32 to vector<16x1xf32>
    %407 = arith.addf %403, %406 : vector<16x1xf32>
    %408 = math.rsqrt %407 : vector<16x1xf32>
    %409 = vector.broadcast %408 : vector<16x1xf32> to vector<16x32xf32>
    %410 = arith.mulf %405, %409 : vector<16x32xf32>
    %411 = vector.broadcast %391 : vector<1x32xf32> to vector<16x32xf32>
    %412 = arith.mulf %410, %411 : vector<16x32xf32>
    %413 = vector.broadcast %392 : vector<1x32xf32> to vector<16x32xf32>
    %414 = arith.addf %412, %413 : vector<16x32xf32>
    %415 = arith.addf %25, %414 : vector<16x32xf32>
    %c0_136 = arith.constant 0 : index
    %c0_137 = arith.constant 0 : index
    %416 = vector.load %arg10[%c0_136, %c0_137] : memref<1x32xf32, #tpu.memory_space<vmem>>, vector<1x32xf32>
    %c0_138 = arith.constant 0 : index
    %c0_139 = arith.constant 0 : index
    %417 = vector.load %arg11[%c0_138, %c0_139] : memref<1x32xf32, #tpu.memory_space<vmem>>, vector<1x32xf32>
    %cst_140 = arith.constant dense<0.000000e+00> : vector<16xf32>
    %418 = vector.multi_reduction <add>, %415, %cst_140 [1] : vector<16x32xf32> to vector<16xf32>
    %419 = vector.shape_cast %418 : vector<16xf32> to vector<16x1xf32>
    %cst_141 = arith.constant 3.200000e+01 : f32
    %420 = vector.broadcast %cst_141 : f32 to vector<16x1xf32>
    %421 = arith.divf %419, %420 : vector<16x1xf32>
    %422 = vector.broadcast %421 : vector<16x1xf32> to vector<16x32xf32>
    %423 = arith.subf %415, %422 : vector<16x32xf32>
    %424 = arith.mulf %423, %423 : vector<16x32xf32>
    %cst_142 = arith.constant dense<0.000000e+00> : vector<16xf32>
    %425 = vector.multi_reduction <add>, %424, %cst_142 [1] : vector<16x32xf32> to vector<16xf32>
    %426 = vector.shape_cast %425 : vector<16xf32> to vector<16x1xf32>
    %cst_143 = arith.constant 3.200000e+01 : f32
    %427 = vector.broadcast %cst_143 : f32 to vector<16x1xf32>
    %428 = arith.divf %426, %427 : vector<16x1xf32>
    %429 = vector.broadcast %421 : vector<16x1xf32> to vector<16x32xf32>
    %430 = arith.subf %415, %429 : vector<16x32xf32>
    %cst_144 = arith.constant 9.99999974E-6 : f32
    %431 = vector.broadcast %cst_144 : f32 to vector<16x1xf32>
    %432 = arith.addf %428, %431 : vector<16x1xf32>
    %433 = math.rsqrt %432 : vector<16x1xf32>
    %434 = vector.broadcast %433 : vector<16x1xf32> to vector<16x32xf32>
    %435 = arith.mulf %430, %434 : vector<16x32xf32>
    %436 = vector.broadcast %416 : vector<1x32xf32> to vector<16x32xf32>
    %437 = arith.mulf %435, %436 : vector<16x32xf32>
    %438 = vector.broadcast %417 : vector<1x32xf32> to vector<16x32xf32>
    %439 = arith.addf %437, %438 : vector<16x32xf32>
    %440 = arith.truncf %439 : vector<16x32xf32> to vector<16x32xbf16>
    %c0_145 = arith.constant 0 : index
    %c0_146 = arith.constant 0 : index
    %441 = vector.load %arg12[%c0_145, %c0_146] : memref<32x64xbf16, #tpu.memory_space<vmem>>, vector<32x64xbf16>
    %cst_147 = arith.constant dense<0.000000e+00> : vector<16x64xf32>
    %442 = tpu.matmul %440, %441, %cst_147 {dimension_numbers = #tpu.dot_dimension_numbers<[1], [0], [0], [1], [0, 0, 1, 1], [], []>} : vector<16x32xbf16>, vector<32x64xbf16>, vector<16x64xf32> -> vector<16x64xf32>
    %c0_148 = arith.constant 0 : index
    %c0_149 = arith.constant 0 : index
    %443 = vector.load %arg13[%c0_148, %c0_149] : memref<1x64xf32, #tpu.memory_space<vmem>>, vector<1x64xf32>
    %444 = vector.broadcast %443 : vector<1x64xf32> to vector<16x64xf32>
    %445 = arith.addf %442, %444 : vector<16x64xf32>
    %cst_150 = arith.constant 5.000000e-01 : f32
    %446 = vector.broadcast %cst_150 : f32 to vector<16x64xf32>
    %447 = arith.mulf %446, %445 : vector<16x64xf32>
    %cst_151 = arith.constant 4.471500e-02 : f32
    %448 = vector.broadcast %cst_151 : f32 to vector<16x64xf32>
    %449 = arith.mulf %448, %445 : vector<16x64xf32>
    %450 = arith.mulf %449, %445 : vector<16x64xf32>
    %451 = arith.mulf %450, %445 : vector<16x64xf32>
    %452 = arith.addf %445, %451 : vector<16x64xf32>
    %cst_152 = arith.constant 0.797884583 : f32
    %453 = vector.broadcast %cst_152 : f32 to vector<16x64xf32>
    %454 = arith.mulf %453, %452 : vector<16x64xf32>
    %455 = math.tanh %454 : vector<16x64xf32>
    %cst_153 = arith.constant 1.000000e+00 : f32
    %456 = vector.broadcast %cst_153 : f32 to vector<16x64xf32>
    %457 = arith.addf %456, %455 : vector<16x64xf32>
    %458 = arith.mulf %447, %457 : vector<16x64xf32>
    %c0_154 = arith.constant 0 : index
    %c0_155 = arith.constant 0 : index
    %459 = vector.load %arg14[%c0_154, %c0_155] : memref<1x64xf32, #tpu.memory_space<vmem>>, vector<1x64xf32>
    %c0_156 = arith.constant 0 : index
    %c0_157 = arith.constant 0 : index
    %460 = vector.load %arg15[%c0_156, %c0_157] : memref<1x64xf32, #tpu.memory_space<vmem>>, vector<1x64xf32>
    %cst_158 = arith.constant dense<0.000000e+00> : vector<16xf32>
    %461 = vector.multi_reduction <add>, %458, %cst_158 [1] : vector<16x64xf32> to vector<16xf32>
    %462 = vector.shape_cast %461 : vector<16xf32> to vector<16x1xf32>
    %cst_159 = arith.constant 6.400000e+01 : f32
    %463 = vector.broadcast %cst_159 : f32 to vector<16x1xf32>
    %464 = arith.divf %462, %463 : vector<16x1xf32>
    %465 = vector.broadcast %464 : vector<16x1xf32> to vector<16x64xf32>
    %466 = arith.subf %458, %465 : vector<16x64xf32>
    %467 = arith.mulf %466, %466 : vector<16x64xf32>
    %cst_160 = arith.constant dense<0.000000e+00> : vector<16xf32>
    %468 = vector.multi_reduction <add>, %467, %cst_160 [1] : vector<16x64xf32> to vector<16xf32>
    %469 = vector.shape_cast %468 : vector<16xf32> to vector<16x1xf32>
    %cst_161 = arith.constant 6.400000e+01 : f32
    %470 = vector.broadcast %cst_161 : f32 to vector<16x1xf32>
    %471 = arith.divf %469, %470 : vector<16x1xf32>
    %472 = vector.broadcast %464 : vector<16x1xf32> to vector<16x64xf32>
    %473 = arith.subf %458, %472 : vector<16x64xf32>
    %cst_162 = arith.constant 9.99999974E-6 : f32
    %474 = vector.broadcast %cst_162 : f32 to vector<16x1xf32>
    %475 = arith.addf %471, %474 : vector<16x1xf32>
    %476 = math.rsqrt %475 : vector<16x1xf32>
    %477 = vector.broadcast %476 : vector<16x1xf32> to vector<16x64xf32>
    %478 = arith.mulf %473, %477 : vector<16x64xf32>
    %479 = vector.broadcast %459 : vector<1x64xf32> to vector<16x64xf32>
    %480 = arith.mulf %478, %479 : vector<16x64xf32>
    %481 = vector.broadcast %460 : vector<1x64xf32> to vector<16x64xf32>
    %482 = arith.addf %480, %481 : vector<16x64xf32>
    %483 = arith.truncf %482 : vector<16x64xf32> to vector<16x64xbf16>
    %c0_163 = arith.constant 0 : index
    %c0_164 = arith.constant 0 : index
    %484 = vector.load %arg16[%c0_163, %c0_164] : memref<64x32xbf16, #tpu.memory_space<vmem>>, vector<64x32xbf16>
    %cst_165 = arith.constant dense<0.000000e+00> : vector<16x32xf32>
    %485 = tpu.matmul %483, %484, %cst_165 {dimension_numbers = #tpu.dot_dimension_numbers<[1], [0], [0], [1], [0, 0, 1, 1], [], []>} : vector<16x64xbf16>, vector<64x32xbf16>, vector<16x32xf32> -> vector<16x32xf32>
    %c0_166 = arith.constant 0 : index
    %c0_167 = arith.constant 0 : index
    %486 = vector.load %arg17[%c0_166, %c0_167] : memref<1x32xf32, #tpu.memory_space<vmem>>, vector<1x32xf32>
    %487 = vector.broadcast %486 : vector<1x32xf32> to vector<16x32xf32>
    %488 = arith.addf %485, %487 : vector<16x32xf32>
    %489 = arith.addf %439, %488 : vector<16x32xf32>
    %490 = vector.shape_cast %489 : vector<16x32xf32> to vector<2x8x32xf32>
    %c0_168 = arith.constant 0 : index
    %c0_169 = arith.constant 0 : index
    %c0_170 = arith.constant 0 : index
    %491 = vector.load %arg18[%c0_168, %c0_169, %c0_170] : memref<2x8x32xf32, #tpu.memory_space<vmem>>, vector<2x8x32xf32>
    tpu.vector_store %arg18[%c0_168, %c0_169, %c0_170], %490 {strides = array<i32>} : memref<2x8x32xf32, #tpu.memory_space<vmem>>, vector<2x8x32xf32>,
    return
  }
  func.func @transform_0(%arg0: i32) -> (i32, i32, i32) {
    %c0_i32 = arith.constant 0 : i32
    %c0_i32_0 = arith.constant 0 : i32
    %c0_i32_1 = arith.constant 0 : i32
    return %arg0, %c0_i32, %c0_i32_0 : i32, i32, i32
  }
  func.func @transform_1(%arg0: i32) -> (i32, i32) {
    %c0_i32 = arith.constant 0 : i32
    %c0_i32_0 = arith.constant 0 : i32
    %c0_i32_1 = arith.constant 0 : i32
    return %c0_i32, %c0_i32_0 : i32, i32
  }
  func.func @transform_2(%arg0: i32) -> (i32, i32) {
    %c0_i32 = arith.constant 0 : i32
    %c0_i32_0 = arith.constant 0 : i32
    %c0_i32_1 = arith.constant 0 : i32
    return %c0_i32, %c0_i32_0 : i32, i32
  }
  func.func @transform_3(%arg0: i32) -> (i32, i32) {
    %c0_i32 = arith.constant 0 : i32
    %c0_i32_0 = arith.constant 0 : i32
    %c0_i32_1 = arith.constant 0 : i32
    return %c0_i32, %c0_i32_0 : i32, i32
  }
  func.func @transform_4(%arg0: i32) -> (i32, i32) {
    %c0_i32 = arith.constant 0 : i32
    %c0_i32_0 = arith.constant 0 : i32
    %c0_i32_1 = arith.constant 0 : i32
    return %c0_i32, %c0_i32_0 : i32, i32
  }
  func.func @transform_5(%arg0: i32) -> (i32, i32) {
    %c0_i32 = arith.constant 0 : i32
    %c0_i32_0 = arith.constant 0 : i32
    %c0_i32_1 = arith.constant 0 : i32
    return %c0_i32, %c0_i32_0 : i32, i32
  }
  func.func @transform_6(%arg0: i32) -> (i32, i32) {
    %c0_i32 = arith.constant 0 : i32
    %c0_i32_0 = arith.constant 0 : i32
    %c0_i32_1 = arith.constant 0 : i32
    return %c0_i32, %c0_i32_0 : i32, i32
  }
  func.func @transform_7(%arg0: i32) -> (i32, i32) {
    %c0_i32 = arith.constant 0 : i32
    %c0_i32_0 = arith.constant 0 : i32
    %c0_i32_1 = arith.constant 0 : i32
    return %c0_i32, %c0_i32_0 : i32, i32
  }
  func.func @transform_8(%arg0: i32) -> (i32, i32) {
    %c0_i32 = arith.constant 0 : i32
    %c0_i32_0 = arith.constant 0 : i32
    %c0_i32_1 = arith.constant 0 : i32
    return %c0_i32, %c0_i32_0 : i32, i32
  }
  func.func @transform_9(%arg0: i32) -> (i32, i32) {
    %c0_i32 = arith.constant 0 : i32
    %c0_i32_0 = arith.constant 0 : i32
    %c0_i32_1 = arith.constant 0 : i32
    return %c0_i32, %c0_i32_0 : i32, i32
  }
  func.func @transform_10(%arg0: i32) -> (i32, i32) {
    %c0_i32 = arith.constant 0 : i32
    %c0_i32_0 = arith.constant 0 : i32
    %c0_i32_1 = arith.constant 0 : i32
    return %c0_i32, %c0_i32_0 : i32, i32
  }
  func.func @transform_11(%arg0: i32) -> (i32, i32) {
    %c0_i32 = arith.constant 0 : i32
    %c0_i32_0 = arith.constant 0 : i32
    %c0_i32_1 = arith.constant 0 : i32
    return %c0_i32, %c0_i32_0 : i32, i32
  }
  func.func @transform_12(%arg0: i32) -> (i32, i32) {
    %c0_i32 = arith.constant 0 : i32
    %c0_i32_0 = arith.constant 0 : i32
    %c0_i32_1 = arith.constant 0 : i32
    return %c0_i32, %c0_i32_0 : i32, i32
  }
  func.func @transform_13(%arg0: i32) -> (i32, i32) {
    %c0_i32 = arith.constant 0 : i32
    %c0_i32_0 = arith.constant 0 : i32
    %c0_i32_1 = arith.constant 0 : i32
    return %c0_i32, %c0_i32_0 : i32, i32
  }
  func.func @transform_14(%arg0: i32) -> (i32, i32) {
    %c0_i32 = arith.constant 0 : i32
    %c0_i32_0 = arith.constant 0 : i32
    %c0_i32_1 = arith.constant 0 : i32
    return %c0_i32, %c0_i32_0 : i32, i32
  }
  func.func @transform_15(%arg0: i32) -> (i32, i32) {
    %c0_i32 = arith.constant 0 : i32
    %c0_i32_0 = arith.constant 0 : i32
    %c0_i32_1 = arith.constant 0 : i32
    return %c0_i32, %c0_i32_0 : i32, i32
  }
  func.func @transform_16(%arg0: i32) -> (i32, i32) {
    %c0_i32 = arith.constant 0 : i32
    %c0_i32_0 = arith.constant 0 : i32
    %c0_i32_1 = arith.constant 0 : i32
    return %c0_i32, %c0_i32_0 : i32, i32
  }
  func.func @transform_17(%arg0: i32) -> (i32, i32, i32) {
    %c0_i32 = arith.constant 0 : i32
    %c0_i32_0 = arith.constant 0 : i32
    %c0_i32_1 = arith.constant 0 : i32
    return %arg0, %c0_i32, %c0_i32_0 : i32, i32, i32
  }
}

</mosaic_0001>

<bundles_post_ra>
// kernel: tpu_custom_call.1
= control target key start
LH: loop header
LB: loop body
LE: loop exit
PB: predicated region body
PF: predicated region fallthrough
CT: control target
= control target key end

     0   :  { %s3865_s0 = inlined_call_operand.vmem [shape: f32[2,8,32], index: 0, kind: input, shape index: {}]   ;;  %s3866_s1 = inlined_call_operand.vmem [shape: f32[1,32], index: 1, kind: input, shape index: {}]   ;;  %s3867_s2 = inlined_call_operand.vmem [shape: f32[1,32], index: 2, kind: input, shape index: {}]   ;;  %s3868_s3 = inlined_call_operand.vmem [shape: bf16[32,96], index: 3, kind: input, shape index: {}]   ;;  %s3869_s4 = inlined_call_operand.hbm [shape: f32[1,96], index: 4, kind: input, shape index: {}]   ;;  %s3870_s5 = inlined_call_operand.vmem [shape: bf16[32,32], index: 5, kind: input, shape index: {}]   ;;  %s3871_s6 = inlined_call_operand.hbm [shape: f32[1,32], index: 6, kind: input, shape index: {}]   ;;  %s3872_s7 = inlined_call_operand.hbm [shape: f32[1,32], index: 7, kind: input, shape index: {}]   ;;  %s3873_s8 = inlined_call_operand.hbm [shape: f32[1,32], index: 8, kind: input, shape index: {}]   ;;  %s3874_s9 = inlined_call_operand.hbm [shape: f32[1,32], index: 9, kind: input, shape index: {}]   ;;  %s3875_s10 = inlined_call_operand.vmem [shape: f32[1,32], index: 10, kind: input, shape index: {}]   ;;  %s3876_s11 = inlined_call_operand.vmem [shape: bf16[32,64], index: 11, kind: input, shape index: {}]   ;;  %s3877_s12 = inlined_call_operand.vmem [shape: f32[1,64], index: 12, kind: input, shape index: {}]   ;;  %s3878_s13 = inlined_call_operand.vmem [shape: f32[1,64], index: 13, kind: input, shape index: {}]   ;;  %s3879_s14 = inlined_call_operand.vmem [shape: f32[1,64], index: 14, kind: input, shape index: {}]   ;;  %s3880_s15 = inlined_call_operand.vmem [shape: bf16[64,32], index: 15, kind: input, shape index: {}]   ;;  %s3881_s16 = inlined_call_operand.vmem [shape: f32[1,32], index: 16, kind: input, shape index: {}]   ;;  %s3882_s17 = inlined_call_operand.hbm [shape: f32[2,8,32], index: 17, kind: output, shape index: {}]  }
   0x1   :  { %3884 = sst [smem:[#allocation17_spill]] %s3865_s0 }
   0x2   :  { %3885 = sst [smem:[#allocation18_spill]] %s3866_s1 }
   0x3   :  { %22 = vsyncpa [#allocation4], 0 }
   0x4   :  { %23 = vsyncpa [#allocation7], 0 }
   0x5   :  { %24 = vsyncpa [#allocation10], 0 }
   0x6   :  { %25 = vsyncpa [#allocation5], 0  ;;  %s3126_s24 = smov [#allocation6]   ;;  %s3127_s26 = smov [#allocation9]  }
   0x7   :  { %s52_s25 = sshll.u32 %s3126_s24, 4  ;;  %s72_s27 = sshll.u32 %s3127_s26, 4  ;;  %s53_s25 = int_to_ptr.vmem [resolvable:$true] %s52_s25  ;;  %s73_s27 = int_to_ptr.vmem [resolvable:$true] %s72_s27 }
   0x8   :  { %s2986_s0 = scalar_lea.hbm %s3871_s6, 16 }
   0x9   :  { %p2987_p0 = scmp.ne.s32.totalorder %s3871_s6, %s2986_s0  ;;  %p2990_p1 = scmp.lt.u32.totalorder %s2986_s0, %s3871_s6 }
   0xb   :  { %p2992_p2 = pnand %p2990_p1, %p2987_p0 }
   0xd   :  { %2995 = shalt.err (!%p2992_p2)
}
   0xe   :  { %s2996_s20 = scalar_lea.vmem %s53_s25, 16  ;;  %s3000_s21 = scalar_lea.vmem %s53_s25, 32 }
   0xf   :  { %p2997_p3 = scmp.ne.s32.totalorder %s53_s25, %s2996_s20  ;;  %p3001_p4 = scmp.lt.s32.totalorder %s53_s25, %s53_s25 }
  0x10   :  { %p3002_p5 = scmp.lt.s32.totalorder %s3000_s21, %s2996_s20 }
  0x12   :  { %p3003_p6 = por %p3002_p5, %p3001_p4 }
  0x14   :  { %p3004_p7 = pnand %p3003_p6, %p2997_p3 }
  0x16   :  { %3007 = shalt.err (!%p3004_p7)
}
  0x17   :  { %55 = dma.hbm_to_vmem [thread:$0]  %s3871_s6, 16, %s53_s25, [#allocation7]  }
  0x18   :  { %s3008_s28 = scalar_lea.hbm %s3873_s8, 16 }
  0x19   :  { %p3009_p8 = scmp.ne.s32.totalorder %s3873_s8, %s3008_s28  ;;  %p3012_p9 = scmp.lt.u32.totalorder %s3008_s28, %s3873_s8 }
  0x1b   :  { %p3014_p10 = pnand %p3012_p9, %p3009_p8 }
  0x1d   :  { %3017 = shalt.err (!%p3014_p10)
}
  0x1e   :  { %s3018_s19 = scalar_lea.vmem %s73_s27, 16  ;;  %s3022_s1 = scalar_lea.vmem %s73_s27, 32 }
  0x1f   :  { %p3019_p11 = scmp.ne.s32.totalorder %s73_s27, %s3018_s19  ;;  %p3023_p12 = scmp.lt.s32.totalorder %s73_s27, %s73_s27 }
  0x20   :  { %p3024_p13 = scmp.lt.s32.totalorder %s3022_s1, %s3018_s19 }
  0x22   :  { %p3025_p0 = por %p3024_p13, %p3023_p12 }
  0x24   :  { %p3026_p1 = pnand %p3025_p0, %p3019_p11 }
  0x26   :  { %3029 = shalt.err (!%p3026_p1)
}
  0x27   :  { %75 = dma.hbm_to_vmem [thread:$0]  %s3873_s8, 16, %s73_s27, [#allocation10]  }
  0x28   :  { %s3128_s20 = smov [#allocation3]   ;;  %s3129_s22 = smov [#allocation8]  }
  0x29   :  { %s40_s21 = sshll.u32 %s3128_s20, 4  ;;  %s62_s23 = sshll.u32 %s3129_s22, 4  ;;  %s41_s21 = int_to_ptr.vmem [resolvable:$true] %s40_s21  ;;  %s63_s23 = int_to_ptr.vmem [resolvable:$true] %s62_s23 }
  0x2a   :  { %s3030_s28 = scalar_lea.hbm %s3869_s4, 16 }
  0x2b   :  { %p3031_p2 = scmp.ne.s32.totalorder %s3869_s4, %s3030_s28  ;;  %p3034_p3 = scmp.lt.u32.totalorder %s3030_s28, %s3869_s4 }
  0x2d   :  { %p3036_p4 = pnand %p3034_p3, %p3031_p2 }
  0x2f   :  { %3039 = shalt.err (!%p3036_p4)
}
  0x30   :  { %s3040_s8 = scalar_lea.vmem %s41_s21, 16  ;;  %s3044_s27 = scalar_lea.vmem %s41_s21, 32 }
  0x31   :  { %p3041_p5 = scmp.ne.s32.totalorder %s41_s21, %s3040_s8  ;;  %p3045_p6 = scmp.lt.s32.totalorder %s41_s21, %s41_s21 }
  0x32   :  { %p3046_p7 = scmp.lt.s32.totalorder %s3044_s27, %s3040_s8 }
  0x34   :  { %p3047_p8 = por %p3046_p7, %p3045_p6 }
  0x36   :  { %p3048_p9 = pnand %p3047_p8, %p3041_p5 }
  0x38   :  { %3051 = shalt.err (!%p3048_p9)
}
  0x39   :  { %43 = dma.hbm_to_vmem [thread:$0]  %s3869_s4, 16, %s41_s21, [#allocation4]  }
  0x3a   :  { %s3052_s20 = scalar_lea.hbm %s3872_s7, 16 }
  0x3b   :  { %p3053_p10 = scmp.ne.s32.totalorder %s3872_s7, %s3052_s20  ;;  %p3056_p11 = scmp.lt.u32.totalorder %s3052_s20, %s3872_s7 }
  0x3d   :  { %p3058_p12 = pnand %p3056_p11, %p3053_p10 }
  0x3f   :  { %3061 = shalt.err (!%p3058_p12)
}
  0x40   :  { %s3062_s29 = scalar_lea.vmem %s63_s23, 16  ;;  %s3066_s0 = scalar_lea.vmem %s63_s23, 32 }
  0x41   :  { %p3063_p13 = scmp.ne.s32.totalorder %s63_s23, %s3062_s29  ;;  %p3067_p0 = scmp.lt.s32.totalorder %s63_s23, %s63_s23 }
  0x42   :  { %p3068_p1 = scmp.lt.s32.totalorder %s3066_s0, %s3062_s29 }
  0x44   :  { %p3069_p2 = por %p3068_p1, %p3067_p0 }
  0x46   :  { %p3070_p3 = pnand %p3069_p2, %p3063_p13 }
  0x48   :  { %3073 = shalt.err (!%p3070_p3)
}
  0x49   :  { %65 = dma.hbm_to_vmem [thread:$0]  %s3872_s7, 16, %s63_s23, [#allocation7]  }
  0x4a   :  { %s3130_s30 = smov [#allocation11]   ;;  %s3074_s19 = scalar_lea.hbm %s3874_s9, 16 }
  0x4b   :  { %s82_s18 = sshll.u32 %s3130_s30, 4  ;;  %p3075_p4 = scmp.ne.s32.totalorder %s3874_s9, %s3074_s19  ;;  %s83_s18 = int_to_ptr.vmem [resolvable:$true] %s82_s18 }
  0x4c   :  { %p3078_p5 = scmp.lt.u32.totalorder %s3074_s19, %s3874_s9 }
  0x4e   :  { %p3080_p6 = pnand %p3078_p5, %p3075_p4 }
  0x50   :  { %3083 = shalt.err (!%p3080_p6)
}
  0x51   :  { %s3084_s22 = scalar_lea.vmem %s83_s18, 16  ;;  %s3088_s7 = scalar_lea.vmem %s83_s18, 32 }
  0x52   :  { %p3085_p7 = scmp.ne.s32.totalorder %s83_s18, %s3084_s22  ;;  %p3089_p8 = scmp.lt.s32.totalorder %s83_s18, %s83_s18 }
  0x53   :  { %p3090_p9 = scmp.lt.s32.totalorder %s3088_s7, %s3084_s22 }
  0x55   :  { %p3091_p10 = por %p3090_p9, %p3089_p8 }
  0x57   :  { %p3092_p11 = pnand %p3091_p10, %p3085_p7 }
  0x59   :  { %3095 = shalt.err (!%p3092_p11)
}
  0x5a   :  { %85 = dma.hbm_to_vmem [thread:$0]  %s3874_s9, 16, %s83_s18, [#allocation10]  }
  0x5b   :  { %3118 = dma.done.wait [#allocation4], 16  }
  0x5c   :  { %3119 = vsyncadd [#allocation4], 4294967280 }
  0x5d   :  { %3120 = dma.done.wait [#allocation7], 32  }
  0x5e   :  { %3121 = vsyncadd [#allocation7], 4294967264 }
  0x5f   :  { %3122 = dma.done.wait [#allocation10], 32  }
  0x60   :  { %3123 = vsyncadd [#allocation10], 4294967264  ;;  %vm120_vm0 = vcmask 261120   ;;  %s3886_s29 = sld [smem:[#allocation17_spill]]  ;;  %v2892_v14 = vld [vmem:[%s3868_s3] sm:$0xff]   ;;  %v3131_v15 = vmov 0.0  }
  0x61   :  { %2625 = vmatprep.subr.bf16.mxu0 %v3131_v15  ;;  %vm3132_vm1 = vmmov 0   ;;  %v2893_v16 = vld [vmem:[%s3868_s3 + $0x8] sm:$0xff]   ;;  %2633 = vmatprep.subr.bf16.mxu1 %v3131_v15  ;;  %s3887_s27 = sld [smem:[#allocation18_spill]]  ;;  %v2490_v29 = vld [vmem:[%s3867_s2] ss:$0 sm:$0xff]  ;;  %s3133_s2 = smov 92  }
  0x62   :  { %2629 = vmatprep.mubr.msk.bf16.mxu0 %vm3132_vm1, %v3131_v15  ;;  %2626 = vmatpush3.bf16.msra.mxu0 %v2892_v14  ;;  %v2491_v34 = vld [vmem:[#allocation3] ss:$0 sm:$0xff]  ;;  %s3134_s6 = smov 96   ;;  %s3135_s25 = smov 124   ;;  %vm236_vm2 = vcmask 31744   ;;  %vm284_vm3 = vcmask 64512  }
  0x63   :  { %2627 = vmatprep.subr.bf16.mxu0 %v3131_v15  ;;  %2635 = vmatprep.mubr.msk.bf16.mxu1 %vm3132_vm1, %v3131_v15  ;;  %s3136_s20 = smov 120   ;;  %s3137_s22 = smov 88   ;;  %vm302_vm4 = vcmask 1043456   ;;  %vm462_vm5 = vcmask 64544   ;;  %vm579_vm6 = vcmask 97344   ;;  %vm696_vm7 = vcmask 130144  }
  0x64   :  { %s3138_s7 = smov 116   ;;  %s3139_s23 = smov 84   ;;  %vm813_vm8 = vcmask 162944   ;;  %vm930_vm9 = vcmask 195744   ;;  %vm1047_vm10 = vcmask 228544   ;;  %vm1164_vm11 = vcmask 261344  }
  0x65   :  { %s3140_s24 = smov 112   ;;  %s3141_s26 = smov 80   ;;  %vm2338_vm12 = vcmask 523264  }
  0x66   :  { %v116_v0 = vld [vmem:[%s3886_s29] sm:$0xff]  ;;  %v117_v1 = vld [vmem:[%s3886_s29 + $0x8] sm:$0xff]  ;;  %2628 = vmatpush3.bf16.msra.mxu0 %v2893_v16  ;;  %s3142_s28 = smov 108   ;;  %s3143_s29 = smov 76  }
  0x67   :  { %v121_v2 = vsel %vm120_vm0, %v116_v0, 0.0  ;;  %v124_v3 = vsel %vm120_vm0, %v117_v1, 0.0  ;;  %2639 = vmatprep.subr.bf16.mxu0 %v3131_v15  ;;  %v2489_v25 = vld [vmem:[%s3887_s27] ss:$0 sm:$0xff]  ;;  %s3144_s0 = smov 104   ;;  %s3145_s4 = smov 72  }
  0x68   :  { %122 = vadd.xlane.f32.xlu0 %v121_v2  ;;  %s3146_s9 = smov 100   ;;  %s3147_s21 = smov 68  }
  0x69   :  { %s3148_s30 = smov 60   ;;  %s3149_s18 = smov 64  }
  0x6a   :  { %s3150_s3 = smov 56   ;;  %s3151_s8 = smov 52  }
  0x6b   :  { %s3152_s27 = smov 48   ;;  %s3153_s19 = smov 44  }
  0x6c   :  { %125 = vadd.xlane.f32.xlu0 %v124_v3  ;;  %s3154_s1 = smov 40  }
  0xf5   :  { %v123_v4 = vpop.xlane.xlu0 %122 }
  0xf6   :  { %v128_v5 = vmul.f32 0.03125, %v123_v4 }
  0xf8   :  { %v130_v6 = vsub.f32 %v116_v0, %v128_v5 }
  0xf9   :  { %v126_v7 = vpop.xlane.xlu0 %125 }
  0xfa   :  { %v129_v8 = vmul.f32 0.03125, %v126_v7  ;;  %v132_v9 = vmul.f32 %v130_v6, %v130_v6 }
  0xfc   :  { %v131_v10 = vsub.f32 %v117_v1, %v129_v8  ;;  %v134_v11 = vsel %vm120_vm0, %v132_v9, 0.0 }
  0xfd   :  { %135 = vadd.xlane.f32.xlu1 %v134_v11 }
  0xfe   :  { %v133_v12 = vmul.f32 %v131_v10, %v131_v10 }
 0x100   :  { %v137_v13 = vsel %vm120_vm0, %v133_v12, 0.0 }
 0x101   :  { %138 = vadd.xlane.f32.xlu1 %v137_v13 }
 0x18a   :  { %v136_v17 = vpop.xlane.xlu1 %135 }
 0x18b   :  { %v140_v18 = vmul.f32 0.03125, %v136_v17 }
 0x18d   :  { %v142_v19 = vadd.f32 1e-05, %v140_v18 }
 0x18e   :  { %v139_v20 = vpop.xlane.xlu1 %138 }
 0x18f   :  { %2902 = vrsqrt.f32 %v142_v19  ;;  %v141_v21 = vmul.f32 0.03125, %v139_v20 }
 0x191   :  { %v143_v22 = vadd.f32 1e-05, %v141_v21 }
 0x193   :  { %2904 = vrsqrt.f32 %v143_v22 }
 0x199   :  { %v2903_v23 = vpop.eup %2902 }
 0x19a   :  { %v146_v24 = vmul.f32 %v2903_v23, %v130_v6 }
 0x19c   :  { %v154_v28 = vmul.f32 %v2489_v25, %v146_v24 }
 0x19d   :  { %v2905_v26 = vpop.eup %2904 }
 0x19e   :  { %v147_v27 = vmul.f32 %v2905_v26, %v131_v10  ;;  %v3345_v31 = vadd.f32 %v2490_v29, %v154_v28 }
 0x1a0   :  { %v155_v30 = vmul.f32 %v2489_v25, %v147_v27 }
 0x1a2   :  { %v3347_v32 = vadd.f32 %v2490_v29, %v155_v30 }
 0x1a4   :  { %v164_v33 = vpack.c.bf16 %v3347_v32, %v3345_v31 }
 0x1a6   :  { %2630 = vmatmul.mubr.msk.bf16.vlgmr.msra.gmra.mrb[0].mxu0 %vm120_vm0, %v164_v33 }
 0x1a7   :  { %2641 = vmatprep.mubr.msk.bf16.mxu0 %vm3132_vm1, %v3131_v15 }
 0x279   :  { %v225_v35 = vpop.f32.mrb[0].mxu0 }
 0x27a   :  { %v226_v36 = vadd.f32 %v2491_v34, %v225_v35  ;;  %v2631_v37 = vpop.f32.mrb[1].mxu0 }
 0x27b   :  { %v228_v38 = vpop.f32.mrb[2].mxu0 }
 0x27c   :  { %v3354_v39 = vpack.c.bf16 %v226_v36, %v226_v36  ;;  %v2632_v40 = vpop.f32.mrb[3].mxu0  ;;  %v229_v41 = vadd.f32 %v2491_v34, %v228_v38 }
 0x27e   :  { %349 = vrot.lane.b32.xlu1 %v3354_v39, %s3133_s2  ;;  %234 = vrot.lane.b32.xlu0 %v3354_v39, %s3134_s6  ;;  %v3375_v42 = vpack.c.bf16 %v229_v41, %v229_v41 }
 0x282   :  { %347 = vrot.lane.b32.xlu1 %v3354_v39, %s3135_s25  ;;  %464 = vrot.lane.b32.xlu0 %v3354_v39, %s3136_s20 }
 0x286   :  { %466 = vrot.lane.b32.xlu1 %v3354_v39, %s3137_s22  ;;  %581 = vrot.lane.b32.xlu0 %v3354_v39, %s3138_s7 }
 0x28a   :  { %583 = vrot.lane.b32.xlu1 %v3354_v39, %s3139_s23  ;;  %698 = vrot.lane.b32.xlu0 %v3354_v39, %s3140_s24 }
 0x28e   :  { %700 = vrot.lane.b32.xlu1 %v3354_v39, %s3141_s26  ;;  %815 = vrot.lane.b32.xlu0 %v3354_v39, %s3142_s28 }
 0x292   :  { %817 = vrot.lane.b32.xlu1 %v3354_v39, %s3143_s29  ;;  %932 = vrot.lane.b32.xlu0 %v3354_v39, %s3144_s0 }
 0x296   :  { %934 = vrot.lane.b32.xlu1 %v3354_v39, %s3145_s4  ;;  %1049 = vrot.lane.b32.xlu0 %v3354_v39, %s3146_s9 }
 0x29a   :  { %1051 = vrot.lane.b32.xlu1 %v3354_v39, %s3147_s21  ;;  %1280 = vrot.lane.b32.xlu0 %v3375_v42, %s3133_s2  ;;  %s3155_s2 = smov 36  }
 0x29e   :  { %1396 = vrot.lane.b32.xlu0 %v3375_v42, %s3137_s22  ;;  %1168 = vrot.lane.b32.xlu1 %v3375_v42, %s3134_s6  ;;  %s3156_s6 = smov 4   ;;  %s3159_s22 = smov 16  }
 0x2a2   :  { %1512 = vrot.lane.b32.xlu0 %v3375_v42, %s3139_s23  ;;  %1278 = vrot.lane.b32.xlu1 %v3375_v42, %s3135_s25  ;;  %s3157_s25 = smov 8   ;;  %s3161_s23 = smov 24  }
 0x2a6   :  { %1628 = vrot.lane.b32.xlu0 %v3375_v42, %s3141_s26  ;;  %1394 = vrot.lane.b32.xlu1 %v3375_v42, %s3136_s20  ;;  %s3158_s20 = smov 12  }
 0x2aa   :  { %1744 = vrot.lane.b32.xlu0 %v3375_v42, %s3143_s29  ;;  %1510 = vrot.lane.b32.xlu1 %v3375_v42, %s3138_s7  ;;  %s3160_s7 = smov 20  }
 0x2ae   :  { %1860 = vrot.lane.b32.xlu0 %v3375_v42, %s3145_s4  ;;  %1626 = vrot.lane.b32.xlu1 %v3375_v42, %s3140_s24  ;;  %s3162_s24 = smov 28  }
 0x2b2   :  { %1976 = vrot.lane.b32.xlu0 %v3375_v42, %s3147_s21  ;;  %1742 = vrot.lane.b32.xlu1 %v3375_v42, %s3142_s28 }
 0x2b6   :  { %1858 = vrot.lane.b32.xlu1 %v3375_v42, %s3144_s0 }
 0x2ba   :  { %1974 = vrot.lane.b32.xlu1 %v3375_v42, %s3146_s9 }
 0x2f0   :  { %v235_v43 = vpop.permute.xlu0 %234  ;;  %v350_v45 = vpop.permute.xlu1 %349 }
 0x2f1   :  { %v241_v44 = vsel %vm236_vm2, %v235_v43, 0  ;;  %v355_v47 = vsel %vm236_vm2, %v350_v45, 0 }
 0x2f2   :  { %2634 = vmatpush3.bf16.xpose.msra.mxu1 %v241_v44 }
 0x2f3   :  { %2645 = vmatprep.subr.bf16.mxu1 %v3131_v15 }
 0x2f4   :  { %v348_v46 = vpop.permute.xlu1 %347  ;;  %v465_v51 = vpop.permute.xlu0 %464 }
 0x2f8   :  { %v467_v48 = vpop.permute.xlu1 %466  ;;  %v582_v54 = vpop.permute.xlu0 %581 }
 0x2f9   :  { %2636 = vmatmul.mubr.msk.bf16.vlgmr.msra.gmra.mrb[0].mxu1 %vm236_vm2, %v3354_v39  ;;  %v472_v49 = vsel %vm236_vm2, %v467_v48, 0 }
 0x2fa   :  { %2646 = vmatpush3.bf16.xpose.msra.mxu1 %v355_v47  ;;  %2647 = vmatprep.mubr.msk.bf16.mxu1 %vm3132_vm1, %v3131_v15 }
 0x2fb   :  { %2657 = vmatprep.subr.bf16.mxu1 %v3131_v15 }
 0x2fc   :  { %v584_v50 = vpop.permute.xlu1 %583  ;;  %v699_v57 = vpop.permute.xlu0 %698 }
 0x2fd   :  { %v589_v52 = vsel %vm236_vm2, %v584_v50, 0 }
 0x300   :  { %v701_v53 = vpop.permute.xlu1 %700  ;;  %v816_v60 = vpop.permute.xlu0 %815 }
 0x301   :  { %2648 = vmatmul.mubr.msk.bf16.vlgmr.msra.gmra.mrb[4].mxu1 %vm236_vm2, %v348_v46  ;;  %v706_v55 = vsel %vm236_vm2, %v701_v53, 0 }
 0x302   :  { %2658 = vmatpush3.bf16.xpose.msra.mxu1 %v472_v49  ;;  %2659 = vmatprep.mubr.msk.bf16.mxu1 %vm3132_vm1, %v3131_v15 }
 0x303   :  { %2669 = vmatprep.subr.bf16.mxu1 %v3131_v15 }
 0x304   :  { %v818_v56 = vpop.permute.xlu1 %817  ;;  %v933_v63 = vpop.permute.xlu0 %932 }
 0x305   :  { %v823_v58 = vsel %vm236_vm2, %v818_v56, 0 }
 0x308   :  { %v935_v59 = vpop.permute.xlu1 %934  ;;  %v1050_v2 = vpop.permute.xlu0 %1049 }
 0x309   :  { %2660 = vmatmul.mubr.msk.bf16.vlgmr.msra.gmra.mrb[8].mxu1 %vm236_vm2, %v465_v51  ;;  %v940_v61 = vsel %vm236_vm2, %v935_v59, 0 }
 0x30a   :  { %2670 = vmatpush3.bf16.xpose.msra.mxu1 %v589_v52  ;;  %2671 = vmatprep.mubr.msk.bf16.mxu1 %vm3132_vm1, %v3131_v15 }
 0x30b   :  { %2681 = vmatprep.subr.bf16.mxu1 %v3131_v15 }
 0x30c   :  { %v1052_v62 = vpop.permute.xlu1 %1051  ;;  %v1281_v4 = vpop.permute.xlu0 %1280 }
 0x30d   :  { %v1057_v0 = vsel %vm236_vm2, %v1052_v62, 0  ;;  %v1286_v5 = vsel %vm236_vm2, %v1281_v4, 0 }
 0x310   :  { %v1169_v1 = vpop.permute.xlu1 %1168  ;;  %v1397_v6 = vpop.permute.xlu0 %1396 }
 0x311   :  { %2672 = vmatmul.mubr.msk.bf16.vlgmr.msra.gmra.mrb[12].mxu1 %vm236_vm2, %v582_v54  ;;  %v1174_v3 = vsel %vm236_vm2, %v1169_v1, 0  ;;  %v1402_v8 = vsel %vm236_vm2, %v1397_v6, 0 }
 0x312   :  { %2682 = vmatpush3.bf16.xpose.msra.mxu1 %v706_v55  ;;  %2683 = vmatprep.mubr.msk.bf16.mxu1 %vm3132_vm1, %v3131_v15 }
 0x313   :  { %2693 = vmatprep.subr.bf16.mxu1 %v3131_v15 }
 0x314   :  { %v1279_v7 = vpop.permute.xlu1 %1278  ;;  %v1513_v9 = vpop.permute.xlu0 %1512 }
 0x315   :  { %v1518_v11 = vsel %vm236_vm2, %v1513_v9, 0 }
 0x318   :  { %v1395_v10 = vpop.permute.xlu1 %1394  ;;  %v1629_v12 = vpop.permute.xlu0 %1628 }
 0x319   :  { %2684 = vmatmul.mubr.msk.bf16.vlgmr.msra.gmra.mrb[16].mxu1 %vm236_vm2, %v699_v57  ;;  %v1634_v14 = vsel %vm236_vm2, %v1629_v12, 0 }
 0x31a   :  { %2694 = vmatpush3.bf16.xpose.msra.mxu1 %v823_v58  ;;  %2695 = vmatprep.mubr.msk.bf16.mxu1 %vm3132_vm1, %v3131_v15 }
 0x31b   :  { %2705 = vmatprep.subr.bf16.mxu1 %v3131_v15 }
 0x31c   :  { %v1511_v13 = vpop.permute.xlu1 %1510  ;;  %v1745_v16 = vpop.permute.xlu0 %1744 }
 0x31d   :  { %v1750_v18 = vsel %vm236_vm2, %v1745_v16, 0 }
 0x320   :  { %v1627_v17 = vpop.permute.xlu1 %1626  ;;  %v1861_v19 = vpop.permute.xlu0 %1860 }
 0x321   :  { %2696 = vmatmul.mubr.msk.bf16.vlgmr.msra.gmra.mrb[20].mxu1 %vm236_vm2, %v816_v60  ;;  %v1866_v21 = vsel %vm236_vm2, %v1861_v19, 0 }
 0x322   :  { %2706 = vmatpush3.bf16.xpose.msra.mxu1 %v940_v61  ;;  %2707 = vmatprep.mubr.msk.bf16.mxu1 %vm3132_vm1, %v3131_v15 }
 0x323   :  { %2717 = vmatprep.subr.bf16.mxu1 %v3131_v15 }
 0x324   :  { %v1743_v20 = vpop.permute.xlu1 %1742  ;;  %v1977_v22 = vpop.permute.xlu0 %1976 }
 0x325   :  { %v1982_v24 = vsel %vm236_vm2, %v1977_v22, 0 }
 0x328   :  { %v1859_v23 = vpop.permute.xlu1 %1858 }
 0x329   :  { %2708 = vmatmul.mubr.msk.bf16.vlgmr.msra.gmra.mrb[24].mxu1 %vm236_vm2, %v933_v63 }
 0x32a   :  { %2718 = vmatpush3.bf16.xpose.msra.mxu1 %v1057_v0  ;;  %2719 = vmatprep.mubr.msk.bf16.mxu1 %vm3132_vm1, %v3131_v15 }
 0x32b   :  { %2729 = vmatprep.subr.bf16.mxu1 %v3131_v15 }
 0x32c   :  { %v1975_v25 = vpop.permute.xlu1 %1974 }
 0x331   :  { %2720 = vmatmul.mubr.msk.bf16.vlgmr.msra.gmra.mrb[28].mxu1 %vm236_vm2, %v1050_v2 }
 0x332   :  { %2730 = vmatpush3.bf16.xpose.msra.mxu1 %v1174_v3  ;;  %2731 = vmatprep.mubr.msk.bf16.mxu1 %vm3132_vm1, %v3131_v15 }
 0x333   :  { %2741 = vmatprep.subr.bf16.mxu1 %v3131_v15 }
 0x339   :  { %2732 = vmatmul.mubr.msk.bf16.vlgmr.msra.gmra.mrb[32].mxu1 %vm236_vm2, %v3375_v42 }
 0x33a   :  { %2742 = vmatpush3.bf16.xpose.msra.mxu1 %v1286_v5  ;;  %2743 = vmatprep.mubr.msk.bf16.mxu1 %vm3132_vm1, %v3131_v15 }
 0x33b   :  { %2753 = vmatprep.subr.bf16.mxu1 %v3131_v15 }
 0x341   :  { %2744 = vmatmul.mubr.msk.bf16.vlgmr.msra.gmra.mrb[36].mxu1 %vm236_vm2, %v1279_v7 }
 0x342   :  { %2754 = vmatpush3.bf16.xpose.msra.mxu1 %v1402_v8  ;;  %2755 = vmatprep.mubr.msk.bf16.mxu1 %vm3132_vm1, %v3131_v15 }
 0x343   :  { %2765 = vmatprep.subr.bf16.mxu1 %v3131_v15 }
 0x349   :  { %2756 = vmatmul.mubr.msk.bf16.vlgmr.msra.gmra.mrb[40].mxu1 %vm236_vm2, %v1395_v10 }
 0x34a   :  { %2766 = vmatpush3.bf16.xpose.msra.mxu1 %v1518_v11  ;;  %2767 = vmatprep.mubr.msk.bf16.mxu1 %vm3132_vm1, %v3131_v15 }
 0x34b   :  { %2777 = vmatprep.subr.bf16.mxu1 %v3131_v15 }
 0x351   :  { %2768 = vmatmul.mubr.msk.bf16.vlgmr.msra.gmra.mrb[44].mxu1 %vm236_vm2, %v1511_v13 }
 0x352   :  { %2778 = vmatpush3.bf16.xpose.msra.mxu1 %v1634_v14  ;;  %2779 = vmatprep.mubr.msk.bf16.mxu1 %vm3132_vm1, %v3131_v15 }
 0x353   :  { %2789 = vmatprep.subr.bf16.mxu1 %v3131_v15 }
 0x359   :  { %2780 = vmatmul.mubr.msk.bf16.vlgmr.msra.gmra.mrb[48].mxu1 %vm236_vm2, %v1627_v17 }
 0x35a   :  { %2790 = vmatpush3.bf16.xpose.msra.mxu1 %v1750_v18  ;;  %2791 = vmatprep.mubr.msk.bf16.mxu1 %vm3132_vm1, %v3131_v15 }
 0x35b   :  { %2801 = vmatprep.subr.bf16.mxu1 %v3131_v15 }
 0x361   :  { %2792 = vmatmul.mubr.msk.bf16.vlgmr.msra.gmra.mrb[52].mxu1 %vm236_vm2, %v1743_v20 }
 0x362   :  { %2802 = vmatpush3.bf16.xpose.msra.mxu1 %v1866_v21  ;;  %2803 = vmatprep.mubr.msk.bf16.mxu1 %vm3132_vm1, %v3131_v15 }
 0x363   :  { %2813 = vmatprep.subr.bf16.mxu1 %v3131_v15 }
 0x369   :  { %2804 = vmatmul.mubr.msk.bf16.vlgmr.msra.gmra.mrb[56].mxu1 %vm236_vm2, %v1859_v23 }
 0x36a   :  { %2814 = vmatpush3.bf16.xpose.msra.mxu1 %v1982_v24  ;;  %2815 = vmatprep.mubr.msk.bf16.mxu1 %vm3132_vm1, %v3131_v15 }
 0x36b   :  { %2825 = vmatprep.subr.bf16.mxu1 %v3131_v15 }
 0x371   :  { %2816 = vmatmul.mubr.msk.bf16.vlgmr.msra.gmra.mrb[60].mxu1 %vm236_vm2, %v1975_v25 }
 0x372   :  { %2829 = vmatprep.mubr.msk.bf16.mxu1 %vm3132_vm1, %v3131_v15 }
 0x3cc   :  { %v277_v26 = vpop.f32.mrb[0].mxu1 }
 0x3cd   :  { %v3480_v27 = vmul.f32 0.5, %v277_v26  ;;  %v2637_v28 = vpop.f32.mrb[1].mxu1 }
 0x3ce   :  { %v280_v29 = vpop.f32.mrb[2].mxu1 }
 0x3cf   :  { %v2638_v30 = vpop.f32.mrb[3].mxu1  ;;  %v285_v33 = vsel %vm284_vm3, %v3480_v27, -inf }
 0x3d0   :  { %286 = vmax.xlane.f32.xlu0 %v285_v33 }
 0x3d4   :  { %v391_v34 = vpop.f32.mrb[4].mxu1 }
 0x3d5   :  { %v3484_v35 = vmul.f32 0.5, %v391_v34  ;;  %v2649_v36 = vpop.f32.mrb[5].mxu1 }
 0x3d6   :  { %v394_v37 = vpop.f32.mrb[6].mxu1 }
 0x3d7   :  { %v2650_v38 = vpop.f32.mrb[7].mxu1  ;;  %v398_v40 = vsel %vm284_vm3, %v3484_v35, -inf }
 0x3d8   :  { %399 = vmax.xlane.f32.xlu1 %v398_v40 }
 0x3dc   :  { %v508_v41 = vpop.f32.mrb[8].mxu1 }
 0x3dd   :  { %v3488_v43 = vmul.f32 0.5, %v508_v41  ;;  %v2661_v44 = vpop.f32.mrb[9].mxu1 }
 0x3de   :  { %v511_v45 = vpop.f32.mrb[10].mxu1 }
 0x3df   :  { %v2662_v46 = vpop.f32.mrb[11].mxu1  ;;  %v515_v47 = vsel %vm284_vm3, %v3488_v43, -inf }
 0x3e0   :  { %516 = vmax.xlane.f32.xlu0 %v515_v47 }
 0x3e4   :  { %v625_v48 = vpop.f32.mrb[12].mxu1 }
 0x3e5   :  { %v3492_v49 = vmul.f32 0.5, %v625_v48  ;;  %v2673_v50 = vpop.f32.mrb[13].mxu1 }
 0x3e6   :  { %v628_v51 = vpop.f32.mrb[14].mxu1 }
 0x3e7   :  { %v2674_v52 = vpop.f32.mrb[15].mxu1  ;;  %v632_v53 = vsel %vm284_vm3, %v3492_v49, -inf }
 0x3e8   :  { %633 = vmax.xlane.f32.xlu0 %v632_v53 }
 0x3ec   :  { %v742_v54 = vpop.f32.mrb[16].mxu1 }
 0x3ed   :  { %v3496_v55 = vmul.f32 0.5, %v742_v54  ;;  %v2685_v56 = vpop.f32.mrb[17].mxu1 }
 0x3ee   :  { %v745_v57 = vpop.f32.mrb[18].mxu1 }
 0x3ef   :  { %v2686_v58 = vpop.f32.mrb[19].mxu1  ;;  %v749_v59 = vsel %vm284_vm3, %v3496_v55, -inf }
 0x3f0   :  { %750 = vmax.xlane.f32.xlu0 %v749_v59 }
 0x3f4   :  { %v859_v60 = vpop.f32.mrb[20].mxu1 }
 0x3f5   :  { %v3500_v61 = vmul.f32 0.5, %v859_v60  ;;  %v2697_v62 = vpop.f32.mrb[21].mxu1 }
 0x3f6   :  { %v862_v63 = vpop.f32.mrb[22].mxu1 }
 0x3f7   :  { %v2698_v0 = vpop.f32.mrb[23].mxu1  ;;  %v866_v1 = vsel %vm284_vm3, %v3500_v61, -inf }
 0x3f8   :  { %867 = vmax.xlane.f32.xlu1 %v866_v1 }
 0x3fc   :  { %v976_v2 = vpop.f32.mrb[24].mxu1 }
 0x3fd   :  { %v3504_v3 = vmul.f32 0.5, %v976_v2  ;;  %v2709_v4 = vpop.f32.mrb[25].mxu1 }
 0x3fe   :  { %v979_v5 = vpop.f32.mrb[26].mxu1 }
 0x3ff   :  { %v2710_v6 = vpop.f32.mrb[27].mxu1  ;;  %v983_v7 = vsel %vm284_vm3, %v3504_v3, -inf }
 0x400   :  { %984 = vmax.xlane.f32.xlu0 %v983_v7 }
 0x404   :  { %v1093_v8 = vpop.f32.mrb[28].mxu1 }
 0x405   :  { %v3508_v9 = vmul.f32 0.5, %v1093_v8  ;;  %v2721_v10 = vpop.f32.mrb[29].mxu1 }
 0x406   :  { %v1096_v11 = vpop.f32.mrb[30].mxu1 }
 0x407   :  { %v2722_v12 = vpop.f32.mrb[31].mxu1  ;;  %v1100_v13 = vsel %vm284_vm3, %v3508_v9, -inf }
 0x408   :  { %1101 = vmax.xlane.f32.xlu1 %v1100_v13 }
 0x40c   :  { %v1210_v14 = vpop.f32.mrb[32].mxu1 }
 0x40d   :  { %v3512_v16 = vmul.f32 0.5, %v1210_v14  ;;  %v2733_v17 = vpop.f32.mrb[33].mxu1 }
 0x40e   :  { %v1213_v18 = vpop.f32.mrb[34].mxu1 }
 0x40f   :  { %v2734_v19 = vpop.f32.mrb[35].mxu1  ;;  %v1217_v20 = vsel %vm284_vm3, %v3512_v16, -inf }
 0x410   :  { %1218 = vmax.xlane.f32.xlu0 %v1217_v20 }
 0x414   :  { %v1322_v21 = vpop.f32.mrb[36].mxu1 }
 0x415   :  { %v3516_v22 = vmul.f32 0.5, %v1322_v21  ;;  %v2745_v23 = vpop.f32.mrb[37].mxu1 }
 0x416   :  { %v1325_v24 = vpop.f32.mrb[38].mxu1 }
 0x417   :  { %v2746_v25 = vpop.f32.mrb[39].mxu1  ;;  %v1329_v26 = vsel %vm284_vm3, %v3516_v22, -inf }
 0x418   :  { %1330 = vmax.xlane.f32.xlu1 %v1329_v26 }
 0x41c   :  { %v1438_v28 = vpop.f32.mrb[40].mxu1 }
 0x41d   :  { %v2757_v29 = vpop.f32.mrb[41].mxu1  ;;  %v3524_v56 = vmul.f32 0.5, %v1438_v28 }
 0x41e   :  { %v1441_v30 = vpop.f32.mrb[42].mxu1 }
 0x41f   :  { %v2758_v33 = vpop.f32.mrb[43].mxu1  ;;  %v1445_v59 = vsel %vm284_vm3, %v3524_v56, -inf }
 0x424   :  { %v1554_v34 = vpop.f32.mrb[44].mxu1 }
 0x425   :  { %v2769_v36 = vpop.f32.mrb[45].mxu1  ;;  %v3526_v57 = vmul.f32 0.5, %v1554_v34 }
 0x426   :  { %410 = vrot.lane.b32.xlu0 %v3354_v39, %s3148_s30  ;;  %v1557_v37 = vpop.f32.mrb[46].mxu1 }
 0x427   :  { %v2770_v38 = vpop.f32.mrb[47].mxu1  ;;  %v1561_v1 = vsel %vm284_vm3, %v3526_v57, -inf }
 0x429   :  { %297 = vrot.lane.b32.xlu1 %v3354_v39, %s3149_s18 }
 0x42c   :  { %v1670_v40 = vpop.f32.mrb[48].mxu1 }
 0x42d   :  { %v2781_v41 = vpop.f32.mrb[49].mxu1  ;;  %v3530_v0 = vmul.f32 0.5, %v1670_v40 }
 0x42e   :  { %v1673_v44 = vpop.f32.mrb[50].mxu1 }
 0x42f   :  { %v2782_v45 = vpop.f32.mrb[51].mxu1  ;;  %v1677_v4 = vsel %vm284_vm3, %v3530_v0, -inf }
 0x434   :  { %v1786_v46 = vpop.f32.mrb[52].mxu1 }
 0x435   :  { %v2793_v47 = vpop.f32.mrb[53].mxu1  ;;  %v3534_v2 = vmul.f32 0.5, %v1786_v46 }
 0x436   :  { %v1789_v48 = vpop.f32.mrb[54].mxu1 }
 0x437   :  { %v2794_v50 = vpop.f32.mrb[55].mxu1  ;;  %v1793_v6 = vsel %vm284_vm3, %v3534_v2, -inf }
 0x43c   :  { %v1902_v51 = vpop.f32.mrb[56].mxu1 }
 0x43d   :  { %v2805_v52 = vpop.f32.mrb[57].mxu1  ;;  %v3538_v5 = vmul.f32 0.5, %v1902_v51 }
 0x43e   :  { %v1905_v53 = vpop.f32.mrb[58].mxu1 }
 0x43f   :  { %v2806_v54 = vpop.f32.mrb[59].mxu1  ;;  %v1909_v8 = vsel %vm284_vm3, %v3538_v5, -inf }
 0x444   :  { %v2018_v58 = vpop.f32.mrb[60].mxu1 }
 0x445   :  { %1446 = vmax.xlane.f32.xlu0 %v1445_v59  ;;  %v2817_v60 = vpop.f32.mrb[61].mxu1  ;;  %v3542_v7 = vmul.f32 0.5, %v2018_v58 }
 0x446   :  { %v2021_v62 = vpop.f32.mrb[62].mxu1 }
 0x447   :  { %v2818_v63 = vpop.f32.mrb[63].mxu1  ;;  %v2025_v10 = vsel %vm284_vm3, %v3542_v7, -inf }
 0x449   :  { %1562 = vmax.xlane.f32.xlu0 %v1561_v1 }
 0x44d   :  { %1678 = vmax.xlane.f32.xlu0 %v1677_v4 }
 0x451   :  { %1794 = vmax.xlane.f32.xlu0 %v1793_v6 }
 0x455   :  { %1910 = vmax.xlane.f32.xlu0 %v1909_v8 }
 0x459   :  { %2026 = vmax.xlane.f32.xlu0 %v2025_v10 }
 0x45d   :  { %v287_v11 = vpop.xlane.xlu0 %286 }
 0x45e   :  { %v288_v12 = vsub.f32 %v3480_v27, %v287_v11 }
 0x460   :  { %v289_v13 = vmul.f32 1.442695, %v288_v12 }
 0x462   :  { %2906 = vpow2.f32 %v289_v13 }
 0x465   :  { %v400_v14 = vpop.xlane.xlu1 %399 }
 0x466   :  { %v401_v17 = vsub.f32 %v3484_v35, %v400_v14 }
 0x468   :  { %v402_v18 = vmul.f32 1.442695, %v401_v17 }
 0x46a   :  { %2908 = vpow2.f32 %v402_v18 }
 0x46c   :  { %v3550_v19 = vpop.eup %2906 }
 0x46d   :  { %v517_v20 = vpop.xlane.xlu0 %516  ;;  %v291_v21 = vsel %vm284_vm3, %v3550_v19, 0.0 }
 0x46e   :  { %v518_v23 = vsub.f32 %v3488_v43, %v517_v20  ;;  %292 = vadd.xlane.f32.xlu1 %v291_v21 }
 0x470   :  { %v519_v24 = vmul.f32 1.442695, %v518_v23 }
 0x472   :  { %2910 = vpow2.f32 %v519_v24 }
 0x474   :  { %v3555_v25 = vpop.eup %2908 }
 0x475   :  { %v634_v27 = vpop.xlane.xlu0 %633  ;;  %v404_v26 = vsel %vm284_vm3, %v3555_v25, 0.0 }
 0x476   :  { %v635_v35 = vsub.f32 %v3492_v49, %v634_v27  ;;  %405 = vadd.xlane.f32.xlu1 %v404_v26 }
 0x478   :  { %v636_v28 = vmul.f32 1.442695, %v635_v35 }
 0x47a   :  { %2912 = vpow2.f32 %v636_v28 }
 0x47c   :  { %v3560_v29 = vpop.eup %2910 }
 0x47d   :  { %v751_v30 = vpop.xlane.xlu0 %750  ;;  %v521_v43 = vsel %vm284_vm3, %v3560_v29, 0.0 }
 0x47e   :  { %v752_v33 = vsub.f32 %v3496_v55, %v751_v30  ;;  %522 = vadd.xlane.f32.xlu1 %v521_v43 }
 0x480   :  { %v753_v34 = vmul.f32 1.442695, %v752_v33 }
 0x482   :  { %2914 = vpow2.f32 %v753_v34 }
 0x484   :  { %v3565_v36 = vpop.eup %2912 }
 0x485   :  { %v868_v37 = vpop.xlane.xlu1 %867  ;;  %v638_v49 = vsel %vm284_vm3, %v3565_v36, 0.0 }
 0x486   :  { %v869_v38 = vsub.f32 %v3500_v61, %v868_v37  ;;  %639 = vadd.xlane.f32.xlu1 %v638_v49 }
 0x488   :  { %v870_v40 = vmul.f32 1.442695, %v869_v38 }
 0x48a   :  { %2916 = vpow2.f32 %v870_v40 }
 0x48c   :  { %v3570_v41 = vpop.eup %2914 }
 0x48d   :  { %v755_v44 = vsel %vm284_vm3, %v3570_v41, 0.0  ;;  %v985_v48 = vpop.xlane.xlu0 %984 }
 0x48e   :  { %756 = vadd.xlane.f32.xlu0 %v755_v44  ;;  %v986_v51 = vsub.f32 %v3504_v3, %v985_v48 }
 0x490   :  { %v987_v52 = vmul.f32 1.442695, %v986_v51 }
 0x492   :  { %2918 = vpow2.f32 %v987_v52 }
 0x494   :  { %v3574_v55 = vpop.eup %2916 }
 0x495   :  { %v872_v45 = vsel %vm284_vm3, %v3574_v55, 0.0  ;;  %v1102_v46 = vpop.xlane.xlu1 %1101 }
 0x496   :  { %873 = vadd.xlane.f32.xlu1 %v872_v45  ;;  %v1103_v53 = vsub.f32 %v3508_v9, %v1102_v46 }
 0x498   :  { %v1104_v58 = vmul.f32 1.442695, %v1103_v53 }
 0x49a   :  { %2920 = vpow2.f32 %v1104_v58 }
 0x49c   :  { %v3596_v62 = vpop.eup %2918 }
 0x49d   :  { %v1219_v54 = vpop.xlane.xlu0 %1218 }
 0x49e   :  { %v1220_v59 = vsub.f32 %v3512_v16, %v1219_v54  ;;  %v989_v16 = vsel %vm284_vm3, %v3596_v62, 0.0 }
 0x4a0   :  { %v1221_v3 = vmul.f32 1.442695, %v1220_v59 }
 0x4a1   :  { %v411_v6 = vpop.permute.xlu0 %410 }
 0x4a2   :  { %2922 = vpow2.f32 %v1221_v3 }
 0x4a4   :  { %527 = vrot.lane.b32.xlu0 %v3354_v39, %s3150_s3  ;;  %v3602_v63 = vpop.eup %2920 }
 0x4a5   :  { %v1331_v61 = vpop.xlane.xlu1 %1330 }
 0x4a6   :  { %v1332_v60 = vsub.f32 %v3516_v22, %v1331_v61 }
 0x4a7   :  { %644 = vrot.lane.b32.xlu1 %v3354_v39, %s3151_s8 }
 0x4a8   :  { %v1333_v9 = vmul.f32 1.442695, %v1332_v60 }
 0x4a9   :  { %v298_v47 = vpop.permute.xlu1 %297 }
 0x4aa   :  { %v304_v50 = vsel %vm302_vm4, %v298_v47, 0  ;;  %2924 = vpow2.f32 %v1333_v9 }
 0x4ab   :  { %761 = vrot.lane.b32.xlu1 %v3354_v39, %s3152_s27  ;;  %2640 = vmatpush3.bf16.msra.mxu0 %v304_v50  ;;  %v416_v50 = vsel %vm302_vm4, %v411_v6, 0 }
 0x4ac   :  { %2651 = vmatprep.subr.bf16.mxu0 %v3131_v15  ;;  %v3608_v22 = vpop.eup %2922 }
 0x4ad   :  { %v1223_v1 = vsel %vm284_vm3, %v3608_v22, 0.0 }
 0x4af   :  { %878 = vrot.lane.b32.xlu1 %v3354_v39, %s3153_s19 }
 0x4b3   :  { %995 = vrot.lane.b32.xlu1 %v3354_v39, %s3154_s1 }
 0x4b4   :  { %v3614_v4 = vpop.eup %2924 }
 0x4b5   :  { %v1335_v8 = vsel %vm284_vm3, %v3614_v4, 0.0 }
 0x4b7   :  { %1112 = vrot.lane.b32.xlu1 %v3354_v39, %s3155_s2  ;;  %v1106_v39 = vsel %vm284_vm3, %v3602_v63, 0.0 }
 0x4bb   :  { %1229 = vrot.lane.b32.xlu1 %v3375_v42, %s3149_s18 }
 0x4bf   :  { %1341 = vrot.lane.b32.xlu1 %v3375_v42, %s3148_s30 }
 0x4c3   :  { %990 = vadd.xlane.f32.xlu0 %v989_v16  ;;  %1457 = vrot.lane.b32.xlu1 %v3375_v42, %s3150_s3 }
 0x4c7   :  { %1573 = vrot.lane.b32.xlu1 %v3375_v42, %s3151_s8  ;;  %1107 = vadd.xlane.f32.xlu0 %v1106_v39 }
 0x4cb   :  { %1689 = vrot.lane.b32.xlu1 %v3375_v42, %s3152_s27  ;;  %1224 = vadd.xlane.f32.xlu0 %v1223_v1 }
 0x4cf   :  { %1921 = vrot.lane.b32.xlu1 %v3375_v42, %s3154_s1  ;;  %1336 = vadd.xlane.f32.xlu0 %v1335_v8 }
 0x4d2   :  { %v1447_v10 = vpop.xlane.xlu0 %1446 }
 0x4d3   :  { %v1448_v11 = vsub.f32 %v3524_v56, %v1447_v10  ;;  %2037 = vrot.lane.b32.xlu1 %v3375_v42, %s3155_s2 }
 0x4d5   :  { %v1449_v12 = vmul.f32 1.442695, %v1448_v11 }
 0x4d6   :  { %v1563_v13 = vpop.xlane.xlu0 %1562 }
 0x4d7   :  { %2926 = vpow2.f32 %v1449_v12  ;;  %v1564_v14 = vsub.f32 %v3526_v57, %v1563_v13 }
 0x4d9   :  { %v1565_v17 = vmul.f32 1.442695, %v1564_v14 }
 0x4da   :  { %v1679_v18 = vpop.xlane.xlu0 %1678 }
 0x4db   :  { %2928 = vpow2.f32 %v1565_v17  ;;  %v1680_v20 = vsub.f32 %v3530_v0, %v1679_v18 }
 0x4dd   :  { %v1681_v21 = vmul.f32 1.442695, %v1680_v20 }
 0x4de   :  { %v1795_v23 = vpop.xlane.xlu0 %1794 }
 0x4df   :  { %2930 = vpow2.f32 %v1681_v21  ;;  %v1796_v24 = vsub.f32 %v3534_v2, %v1795_v23 }
 0x4e1   :  { %v3626_v27 = vpop.eup %2926  ;;  %v1797_v56 = vmul.f32 1.442695, %v1796_v24 }
 0x4e2   :  { %v1911_v26 = vpop.xlane.xlu0 %1910  ;;  %v1451_v35 = vsel %vm284_vm3, %v3626_v27, 0.0 }
 0x4e3   :  { %2932 = vpow2.f32 %v1797_v56  ;;  %v1912_v57 = vsub.f32 %v3538_v5, %v1911_v26  ;;  %1452 = vadd.xlane.f32.xlu0 %v1451_v35 }
 0x4e5   :  { %v3631_v28 = vpop.eup %2928  ;;  %v1913_v30 = vmul.f32 1.442695, %v1912_v57 }
 0x4e6   :  { %v2027_v0 = vpop.xlane.xlu0 %2026  ;;  %v1567_v43 = vsel %vm284_vm3, %v3631_v28, 0.0 }
 0x4e7   :  { %2934 = vpow2.f32 %v1913_v30  ;;  %v2028_v2 = vsub.f32 %v3542_v7, %v2027_v0  ;;  %1568 = vadd.xlane.f32.xlu0 %v1567_v43 }
 0x4e9   :  { %v3636_v33 = vpop.eup %2930  ;;  %v2029_v34 = vmul.f32 1.442695, %v2028_v2 }
 0x4ea   :  { %v1683_v37 = vsel %vm284_vm3, %v3636_v33, 0.0 }
 0x4eb   :  { %2936 = vpow2.f32 %v2029_v34  ;;  %1684 = vadd.xlane.f32.xlu0 %v1683_v37 }
 0x4ed   :  { %v3640_v5 = vpop.eup %2932 }
 0x4ee   :  { %v1799_v49 = vsel %vm284_vm3, %v3640_v5, 0.0 }
 0x4ef   :  { %1800 = vadd.xlane.f32.xlu0 %v1799_v49 }
 0x4f1   :  { %v3644_v38 = vpop.eup %2934 }
 0x4f2   :  { %v1915_v7 = vsel %vm284_vm3, %v3644_v38, 0.0 }
 0x4f3   :  { %1916 = vadd.xlane.f32.xlu0 %v1915_v7 }
 0x4f5   :  { %v3648_v40 = vpop.eup %2936 }
 0x4f6   :  { %v2031_v44 = vsel %vm284_vm3, %v3648_v40, 0.0 }
 0x4f7   :  { %2032 = vadd.xlane.f32.xlu0 %v2031_v44 }
 0x4fb   :  { %v293_v45 = vpop.xlane.xlu1 %292 }
 0x4fc   :  { %2938 = vrcp.f32 %v293_v45 }
 0x503   :  { %v406_v46 = vpop.xlane.xlu1 %405 }
 0x504   :  { %2940 = vrcp.f32 %v406_v46 }
 0x506   :  { %v2939_v61 = vpop.eup %2938 }
 0x507   :  { %v295_v47 = vmul.f32 %v2939_v61, %v3550_v19 }
 0x509   :  { %v296_v48 = vpack.c.bf16 %v295_v47, %v295_v47 }
 0x50b   :  { %2642 = vmatmul.mubr.msk.bf16.vlgmr.msra.gmra.mrb[4].mxu0 %vm284_vm3, %v296_v48  ;;  %v523_v52 = vpop.xlane.xlu1 %522 }
 0x50c   :  { %2652 = vmatpush3.bf16.msra.mxu0 %v416_v50  ;;  %2653 = vmatprep.mubr.msk.bf16.mxu0 %vm3132_vm1, %v3131_v15  ;;  %2942 = vrcp.f32 %v523_v52 }
 0x50d   :  { %1805 = vrot.lane.b32.xlu0 %v3375_v42, %s3153_s19  ;;  %2663 = vmatprep.subr.bf16.mxu0 %v3131_v15 }
 0x50e   :  { %v2941_v51 = vpop.eup %2940 }
 0x50f   :  { %v408_v53 = vmul.f32 %v2941_v51, %v3555_v25 }
 0x511   :  { %v409_v19 = vpack.c.bf16 %v408_v53, %v408_v53 }
 0x513   :  { %2654 = vmatmul.mubr.msk.bf16.vlgmr.msra.gmra.mrb[8].mxu0 %vm284_vm3, %v409_v19  ;;  %v640_v54 = vpop.xlane.xlu1 %639 }
 0x514   :  { %2665 = vmatprep.mubr.msk.bf16.mxu0 %vm3132_vm1, %v3131_v15  ;;  %2944 = vrcp.f32 %v640_v54 }
 0x516   :  { %v2943_v58 = vpop.eup %2942 }
 0x517   :  { %v525_v3 = vmul.f32 %v2943_v58, %v3560_v29 }
 0x519   :  { %v526_v9 = vpack.c.bf16 %v525_v3, %v525_v3 }
 0x51b   :  { %v757_v59 = vpop.xlane.xlu0 %756 }
 0x51c   :  { %2946 = vrcp.f32 %v757_v59 }
 0x51e   :  { %v2945_v25 = vpop.eup %2944 }
 0x51f   :  { %v528_v42 = vpop.permute.xlu0 %527  ;;  %v642_v39 = vmul.f32 %v2945_v25, %v3565_v36 }
 0x520   :  { %v533_v60 = vsel %vm302_vm4, %v528_v42, 0 }
 0x521   :  { %2664 = vmatpush3.bf16.msra.mxu0 %v533_v60  ;;  %v643_v6 = vpack.c.bf16 %v642_v39, %v642_v39 }
 0x522   :  { %2675 = vmatprep.subr.bf16.mxu0 %v3131_v15 }
 0x523   :  { %v874_v16 = vpop.xlane.xlu1 %873 }
 0x524   :  { %2666 = vmatmul.mubr.msk.bf16.vlgmr.msra.gmra.mrb[12].mxu0 %vm284_vm3, %v526_v9  ;;  %2948 = vrcp.f32 %v874_v16 }
 0x525   :  { %2677 = vmatprep.mubr.msk.bf16.mxu0 %vm3132_vm1, %v3131_v15 }
 0x526   :  { %v2947_v8 = vpop.eup %2946 }
 0x527   :  { %v645_v1 = vpop.permute.xlu1 %644  ;;  %v759_v36 = vmul.f32 %v2947_v8, %v3570_v41 }
 0x528   :  { %v650_v29 = vsel %vm302_vm4, %v645_v1, 0 }
 0x529   :  { %2676 = vmatpush3.bf16.msra.mxu0 %v650_v29  ;;  %v760_v13 = vpack.c.bf16 %v759_v36, %v759_v36 }
 0x52a   :  { %2687 = vmatprep.subr.bf16.mxu0 %v3131_v15 }
 0x52b   :  { %v762_v10 = vpop.permute.xlu1 %761 }
 0x52c   :  { %v767_v11 = vsel %vm302_vm4, %v762_v10, 0  ;;  %2678 = vmatmul.mubr.msk.bf16.vlgmr.msra.gmra.mrb[16].mxu0 %vm284_vm3, %v643_v6 }
 0x52d   :  { %2688 = vmatpush3.bf16.msra.mxu0 %v767_v11  ;;  %2689 = vmatprep.mubr.msk.bf16.mxu0 %vm3132_vm1, %v3131_v15 }
 0x52e   :  { %2699 = vmatprep.subr.bf16.mxu0 %v3131_v15  ;;  %v2949_v14 = vpop.eup %2948 }
 0x52f   :  { %v879_v12 = vpop.permute.xlu1 %878  ;;  %v876_v18 = vmul.f32 %v2949_v14, %v3574_v55 }
 0x530   :  { %v884_v17 = vsel %vm302_vm4, %v879_v12, 0 }
 0x531   :  { %v877_v21 = vpack.c.bf16 %v876_v18, %v876_v18 }
 0x533   :  { %v996_v20 = vpop.permute.xlu1 %995 }
 0x534   :  { %2690 = vmatmul.mubr.msk.bf16.vlgmr.msra.gmra.mrb[20].mxu0 %vm284_vm3, %v760_v13  ;;  %v1001_v41 = vsel %vm302_vm4, %v996_v20, 0 }
 0x535   :  { %2700 = vmatpush3.bf16.msra.mxu0 %v884_v17  ;;  %2701 = vmatprep.mubr.msk.bf16.mxu0 %vm3132_vm1, %v3131_v15 }
 0x536   :  { %2711 = vmatprep.subr.bf16.mxu0 %v3131_v15 }
 0x537   :  { %v1113_v35 = vpop.permute.xlu1 %1112 }
 0x538   :  { %v1118_v0 = vsel %vm302_vm4, %v1113_v35, 0 }
 0x53b   :  { %v1230_v34 = vpop.permute.xlu1 %1229 }
 0x53c   :  { %2702 = vmatmul.mubr.msk.bf16.vlgmr.msra.gmra.mrb[24].mxu0 %vm284_vm3, %v877_v21  ;;  %v1235_v49 = vsel %vm302_vm4, %v1230_v34, 0 }
 0x53d   :  { %2712 = vmatpush3.bf16.msra.mxu0 %v1001_v41  ;;  %2713 = vmatprep.mubr.msk.bf16.mxu0 %vm3132_vm1, %v3131_v15 }
 0x53e   :  { %2723 = vmatprep.subr.bf16.mxu0 %v3131_v15 }
 0x550   :  { %v991_v23 = vpop.xlane.xlu0 %990 }
 0x551   :  { %2950 = vrcp.f32 %v991_v23 }
 0x554   :  { %v1108_v24 = vpop.xlane.xlu0 %1107 }
 0x555   :  { %2952 = vrcp.f32 %v1108_v24 }
 0x558   :  { %v1225_v56 = vpop.xlane.xlu0 %1224 }
 0x559   :  { %2954 = vrcp.f32 %v1225_v56 }
 0x55b   :  { %v2951_v55 = vpop.eup %2950 }
 0x55c   :  { %v993_v26 = vmul.f32 %v2951_v55, %v3596_v62  ;;  %v1337_v2 = vpop.xlane.xlu0 %1336 }
 0x55d   :  { %2956 = vrcp.f32 %v1337_v2 }
 0x55e   :  { %v994_v57 = vpack.c.bf16 %v993_v26, %v993_v26 }
 0x55f   :  { %v2953_v30 = vpop.eup %2952 }
 0x560   :  { %2714 = vmatmul.mubr.msk.bf16.vlgmr.msra.gmra.mrb[28].mxu0 %vm284_vm3, %v994_v57  ;;  %v1110_v43 = vmul.f32 %v2953_v30, %v3602_v63  ;;  %v1342_v63 = vpop.permute.xlu1 %1341 }
 0x561   :  { %2724 = vmatpush3.bf16.msra.mxu0 %v1118_v0  ;;  %2725 = vmatprep.mubr.msk.bf16.mxu0 %vm3132_vm1, %v3131_v15  ;;  %v1347_v46 = vsel %vm302_vm4, %v1342_v63, 0 }
 0x562   :  { %2735 = vmatprep.subr.bf16.mxu0 %v3131_v15  ;;  %v1111_v62 = vpack.c.bf16 %v1110_v43, %v1110_v43 }
 0x563   :  { %v2955_v37 = vpop.eup %2954 }
 0x564   :  { %v1227_v7 = vmul.f32 %v2955_v37, %v3608_v22  ;;  %v1458_v48 = vpop.permute.xlu1 %1457 }
 0x565   :  { %v1463_v51 = vsel %vm302_vm4, %v1458_v48, 0 }
 0x566   :  { %v1228_v44 = vpack.c.bf16 %v1227_v7, %v1227_v7 }
 0x567   :  { %v2957_v45 = vpop.eup %2956 }
 0x568   :  { %2726 = vmatmul.mubr.msk.bf16.vlgmr.msra.gmra.mrb[32].mxu0 %vm284_vm3, %v1111_v62  ;;  %v1339_v47 = vmul.f32 %v2957_v45, %v3614_v4  ;;  %v1574_v54 = vpop.permute.xlu1 %1573 }
 0x569   :  { %2736 = vmatpush3.bf16.msra.mxu0 %v1235_v49  ;;  %2737 = vmatprep.mubr.msk.bf16.mxu0 %vm3132_vm1, %v3131_v15  ;;  %v1579_v3 = vsel %vm302_vm4, %v1574_v54, 0 }
 0x56a   :  { %2747 = vmatprep.subr.bf16.mxu0 %v3131_v15  ;;  %v1340_v50 = vpack.c.bf16 %v1339_v47, %v1339_v47 }
 0x56c   :  { %v1690_v9 = vpop.permute.xlu1 %1689 }
 0x56d   :  { %v1695_v39 = vsel %vm302_vm4, %v1690_v9, 0 }
 0x570   :  { %v1453_v61 = vpop.xlane.xlu0 %1452  ;;  %2738 = vmatmul.mubr.msk.bf16.vlgmr.msra.gmra.mrb[36].mxu0 %vm284_vm3, %v1228_v44  ;;  %v1922_v11 = vpop.permute.xlu1 %1921 }
 0x571   :  { %2958 = vrcp.f32 %v1453_v61  ;;  %2748 = vmatpush3.bf16.msra.mxu0 %v1347_v46  ;;  %2749 = vmatprep.mubr.msk.bf16.mxu0 %vm3132_vm1, %v3131_v15  ;;  %v1927_v12 = vsel %vm302_vm4, %v1922_v11, 0 }
 0x572   :  { %2759 = vmatprep.subr.bf16.mxu0 %v3131_v15 }
 0x574   :  { %v1569_v22 = vpop.xlane.xlu0 %1568  ;;  %v2038_v14 = vpop.permute.xlu1 %2037 }
 0x575   :  { %2960 = vrcp.f32 %v1569_v22  ;;  %v2043_v18 = vsel %vm302_vm4, %v2038_v14, 0 }
 0x578   :  { %v1685_v52 = vpop.xlane.xlu0 %1684  ;;  %2750 = vmatmul.mubr.msk.bf16.vlgmr.msra.gmra.mrb[40].mxu0 %vm284_vm3, %v1340_v50 }
 0x579   :  { %2760 = vmatpush3.bf16.msra.mxu0 %v1463_v51  ;;  %2761 = vmatprep.mubr.msk.bf16.mxu0 %vm3132_vm1, %v3131_v15  ;;  %2962 = vrcp.f32 %v1685_v52 }
 0x57a   :  { %2771 = vmatprep.subr.bf16.mxu0 %v3131_v15 }
 0x57b   :  { %v2959_v53 = vpop.eup %2958 }
 0x57c   :  { %v1455_v4 = vmul.f32 %v2959_v53, %v3626_v27  ;;  %v1801_v19 = vpop.xlane.xlu0 %1800 }
 0x57d   :  { %2964 = vrcp.f32 %v1801_v19 }
 0x57e   :  { %v1456_v58 = vpack.c.bf16 %v1455_v4, %v1455_v4 }
 0x57f   :  { %v2961_v59 = vpop.eup %2960 }
 0x580   :  { %2762 = vmatmul.mubr.msk.bf16.vlgmr.msra.gmra.mrb[44].mxu0 %vm284_vm3, %v1456_v58  ;;  %v1917_v42 = vpop.xlane.xlu0 %1916  ;;  %v1571_v60 = vmul.f32 %v2961_v59, %v3631_v28 }
 0x581   :  { %2772 = vmatpush3.bf16.msra.mxu0 %v1579_v3  ;;  %2773 = vmatprep.mubr.msk.bf16.mxu0 %vm3132_vm1, %v3131_v15  ;;  %2966 = vrcp.f32 %v1917_v42 }
 0x582   :  { %2783 = vmatprep.subr.bf16.mxu0 %v3131_v15  ;;  %v1572_v27 = vpack.c.bf16 %v1571_v60, %v1571_v60 }
 0x583   :  { %v2963_v25 = vpop.eup %2962 }
 0x584   :  { %v2033_v16 = vpop.xlane.xlu0 %2032  ;;  %v1687_v1 = vmul.f32 %v2963_v25, %v3636_v33 }
 0x585   :  { %2968 = vrcp.f32 %v2033_v16 }
 0x586   :  { %v1688_v29 = vpack.c.bf16 %v1687_v1, %v1687_v1 }
 0x587   :  { %v2965_v6 = vpop.eup %2964 }
 0x588   :  { %2774 = vmatmul.mubr.msk.bf16.vlgmr.msra.gmra.mrb[48].mxu0 %vm284_vm3, %v1572_v27  ;;  %v1806_v28 = vpop.permute.xlu0 %1805  ;;  %v1803_v10 = vmul.f32 %v2965_v6, %v3640_v5 }
 0x589   :  { %2784 = vmatpush3.bf16.msra.mxu0 %v1695_v39  ;;  %2785 = vmatprep.mubr.msk.bf16.mxu0 %vm3132_vm1, %v3131_v15  ;;  %v1811_v8 = vsel %vm302_vm4, %v1806_v28, 0 }
 0x58a   :  { %2795 = vmatprep.subr.bf16.mxu0 %v3131_v15  ;;  %v1804_v33 = vpack.c.bf16 %v1803_v10, %v1803_v10 }
 0x58b   :  { %v2967_v36 = vpop.eup %2966 }
 0x58c   :  { %v1919_v13 = vmul.f32 %v2967_v36, %v3644_v38 }
 0x58e   :  { %v1920_v5 = vpack.c.bf16 %v1919_v13, %v1919_v13 }
 0x58f   :  { %v2969_v17 = vpop.eup %2968 }
 0x590   :  { %2786 = vmatmul.mubr.msk.bf16.vlgmr.msra.gmra.mrb[52].mxu0 %vm284_vm3, %v1688_v29  ;;  %v2035_v20 = vmul.f32 %v2969_v17, %v3648_v40 }
 0x591   :  { %2796 = vmatpush3.bf16.msra.mxu0 %v1811_v8  ;;  %2797 = vmatprep.mubr.msk.bf16.mxu0 %vm3132_vm1, %v3131_v15 }
 0x592   :  { %2807 = vmatprep.subr.bf16.mxu0 %v3131_v15  ;;  %v2036_v21 = vpack.c.bf16 %v2035_v20, %v2035_v20  ;;  %v2895_v20 = vld [vmem:[%s3870_s5 + $0x8] sm:$0xff]  }
 0x598   :  { %2798 = vmatmul.mubr.msk.bf16.vlgmr.msra.gmra.mrb[56].mxu0 %vm284_vm3, %v1804_v33 }
 0x599   :  { %2808 = vmatpush3.bf16.msra.mxu0 %v1927_v12  ;;  %2809 = vmatprep.mubr.msk.bf16.mxu0 %vm3132_vm1, %v3131_v15 }
 0x59a   :  { %2819 = vmatprep.subr.bf16.mxu0 %v3131_v15 }
 0x5a0   :  { %2810 = vmatmul.mubr.msk.bf16.vlgmr.msra.gmra.mrb[60].mxu0 %vm284_vm3, %v1920_v5 }
 0x5a1   :  { %2820 = vmatpush3.bf16.msra.mxu0 %v2043_v18  ;;  %2821 = vmatprep.mubr.msk.bf16.mxu0 %vm3132_vm1, %v3131_v15  ;;  %v2894_v18 = vld [vmem:[%s3870_s5] sm:$0xff]  }
 0x5a2   :  { %2833 = vmatprep.subr.bf16.mxu0 %v3131_v15  ;;  %2826 = vmatpush3.bf16.msra.mxu1 %v2894_v18 }
 0x5a3   :  { %2827 = vmatprep.subr.bf16.mxu1 %v3131_v15 }
 0x5a6   :  { %2828 = vmatpush3.bf16.msra.mxu1 %v2895_v20 }
 0x5a7   :  { %2841 = vmatprep.subr.bf16.mxu1 %v3131_v15 }
 0x5a8   :  { %2822 = vmatmul.mubr.msk.bf16.vlgmr.msra.gmra.mrb[64].mxu0 %vm284_vm3, %v2036_v21 }
 0x5a9   :  { %2837 = vmatprep.mubr.msk.bf16.mxu0 %vm3132_vm1, %v3131_v15 }
 0x5de   :  { %v340_v38 = vpop.f32.mrb[4].mxu0 }
 0x5df   :  { %346 = vst.msk [vmem:[#allocation2] sm:$0xff] %vm236_vm2, %v340_v38  ;;  %v2643_v41 = vpop.f32.mrb[5].mxu0 }
 0x5e0   :  { %v343_v23 = vpop.f32.mrb[6].mxu0 }
 0x5e1   :  { %v2644_v24 = vpop.f32.mrb[7].mxu0 }
 0x5e6   :  { %v452_v56 = vpop.f32.mrb[8].mxu0 }
 0x5e7   :  { %459 = vrot.lane.b32.xlu1 %v452_v56, %s3156_s6  ;;  %v2655_v55 = vpop.f32.mrb[9].mxu0 }
 0x5e8   :  { %v455_v40 = vpop.f32.mrb[10].mxu0 }
 0x5e9   :  { %v2656_v26 = vpop.f32.mrb[11].mxu0 }
 0x5f7   :  { %v569_v35 = vpop.f32.mrb[12].mxu0 }
 0x5f8   :  { %576 = vrot.lane.b32.xlu1 %v569_v35, %s3157_s25  ;;  %v2667_v57 = vpop.f32.mrb[13].mxu0 }
 0x5f9   :  { %v572_v30 = vpop.f32.mrb[14].mxu0 }
 0x5fa   :  { %v2668_v0 = vpop.f32.mrb[15].mxu0 }
 0x5ff   :  { %v686_v43 = vpop.f32.mrb[16].mxu0 }
 0x600   :  { %693 = vrot.lane.b32.xlu0 %v686_v43, %s3158_s20  ;;  %v2679_v2 = vpop.f32.mrb[17].mxu0 }
 0x601   :  { %v689_v34 = vpop.f32.mrb[18].mxu0 }
 0x602   :  { %v2680_v62 = vpop.f32.mrb[19].mxu0 }
 0x607   :  { %v803_v37 = vpop.f32.mrb[20].mxu0 }
 0x608   :  { %810 = vrot.lane.b32.xlu0 %v803_v37, %s3159_s22  ;;  %v2691_v49 = vpop.f32.mrb[21].mxu0 }
 0x609   :  { %v806_v7 = vpop.f32.mrb[22].mxu0 }
 0x60a   :  { %v2692_v63 = vpop.f32.mrb[23].mxu0 }
 0x60f   :  { %v920_v44 = vpop.f32.mrb[24].mxu0 }
 0x610   :  { %927 = vrot.lane.b32.xlu0 %v920_v44, %s3160_s7  ;;  %v2703_v45 = vpop.f32.mrb[25].mxu0 }
 0x611   :  { %v923_v46 = vpop.f32.mrb[26].mxu0 }
 0x612   :  { %v2704_v61 = vpop.f32.mrb[27].mxu0  ;;  %v2527_v46 = vld [vmem:[#allocation6] ss:$0 sm:$0xff] }
 0x633   :  { %v1037_v47 = vpop.f32.mrb[28].mxu0 }
 0x634   :  { %1044 = vrot.lane.b32.xlu0 %v1037_v47, %s3161_s23  ;;  %v2715_v22 = vpop.f32.mrb[29].mxu0 }
 0x635   :  { %v1040_v48 = vpop.f32.mrb[30].mxu0 }
 0x636   :  { %v2716_v50 = vpop.f32.mrb[31].mxu0 }
 0x63b   :  { %v1154_v51 = vpop.f32.mrb[32].mxu0 }
 0x63c   :  { %1161 = vrot.lane.b32.xlu0 %v1154_v51, %s3162_s24  ;;  %v2727_v52 = vpop.f32.mrb[33].mxu0 }
 0x63d   :  { %v1157_v53 = vpop.f32.mrb[34].mxu0 }
 0x63e   :  { %v2728_v4 = vpop.f32.mrb[35].mxu0 }
 0x643   :  { %v1271_v19 = vpop.f32.mrb[36].mxu0 }
 0x644   :  { %1277 = vst.msk [vmem:[#allocation2 + $0x8] sm:$0xff] %vm236_vm2, %v1271_v19  ;;  %v2739_v54 = vpop.f32.mrb[37].mxu0 }
 0x645   :  { %v1274_v58 = vpop.f32.mrb[38].mxu0 }
 0x646   :  { %v2740_v59 = vpop.f32.mrb[39].mxu0 }
 0x64b   :  { %v1383_v3 = vpop.f32.mrb[40].mxu0 }
 0x64c   :  { %1390 = vrot.lane.b32.xlu1 %v1383_v3, %s3156_s6  ;;  %v2751_v42 = vpop.f32.mrb[41].mxu0 }
 0x64d   :  { %v1386_v60 = vpop.f32.mrb[42].mxu0 }
 0x64e   :  { %v2752_v9 = vpop.f32.mrb[43].mxu0 }
 0x653   :  { %v1499_v27 = vpop.f32.mrb[44].mxu0 }
 0x654   :  { %1506 = vrot.lane.b32.xlu1 %v1499_v27, %s3157_s25  ;;  %v2763_v25 = vpop.f32.mrb[45].mxu0 }
 0x655   :  { %v1502_v16 = vpop.f32.mrb[46].mxu0 }
 0x656   :  { %v2764_v39 = vpop.f32.mrb[47].mxu0 }
 0x659   :  { %v460_v1 = vpop.permute.xlu1 %459 }
 0x65a   :  { %463 = vst.msk [vmem:[#allocation2] sm:$0xff] %vm462_vm5, %v460_v1 }
 0x65b   :  { %v1615_v28 = vpop.f32.mrb[48].mxu0 }
 0x65c   :  { %1622 = vrot.lane.b32.xlu1 %v1615_v28, %s3158_s20  ;;  %v2775_v29 = vpop.f32.mrb[49].mxu0 }
 0x65d   :  { %v1618_v6 = vpop.f32.mrb[50].mxu0 }
 0x65e   :  { %v2776_v8 = vpop.f32.mrb[51].mxu0 }
 0x65f   :  { %v2531_v8 = vld [vmem:[#allocation8] ss:$0 sm:$0xff] }
 0x663   :  { %v1731_v10 = vpop.f32.mrb[52].mxu0 }
 0x664   :  { %1738 = vrot.lane.b32.xlu1 %v1731_v10, %s3159_s22  ;;  %v2787_v11 = vpop.f32.mrb[53].mxu0 }
 0x665   :  { %v1734_v33 = vpop.f32.mrb[54].mxu0  ;;  %v2532_v11 = vld [vmem:[#allocation9] ss:$0 sm:$0xff] }
 0x666   :  { %v2788_v36 = vpop.f32.mrb[55].mxu0 }
 0x66a   :  { %v577_v12 = vpop.permute.xlu1 %576 }
 0x66b   :  { %580 = vst.msk [vmem:[#allocation2] sm:$0xff] %vm579_vm6, %v577_v12  ;;  %v1847_v13 = vpop.f32.mrb[56].mxu0 }
 0x66c   :  { %1854 = vrot.lane.b32.xlu1 %v1847_v13, %s3160_s7  ;;  %v2799_v14 = vpop.f32.mrb[57].mxu0 }
 0x66d   :  { %v1850_v5 = vpop.f32.mrb[58].mxu0 }
 0x66e   :  { %v2800_v17 = vpop.f32.mrb[59].mxu0 }
 0x672   :  { %v694_v21 = vpop.permute.xlu0 %693 }
 0x673   :  { %697 = vst.msk [vmem:[#allocation2] sm:$0xff] %vm696_vm7, %v694_v21  ;;  %v1963_v38 = vpop.f32.mrb[60].mxu0 }
 0x674   :  { %1970 = vrot.lane.b32.xlu1 %v1963_v38, %s3161_s23  ;;  %v2811_v41 = vpop.f32.mrb[61].mxu0 }
 0x675   :  { %v1966_v23 = vpop.f32.mrb[62].mxu0 }
 0x676   :  { %v2812_v24 = vpop.f32.mrb[63].mxu0 }
 0x67a   :  { %v811_v56 = vpop.permute.xlu0 %810 }
 0x67b   :  { %814 = vst.msk [vmem:[#allocation2] sm:$0xff] %vm813_vm8, %v811_v56  ;;  %v2079_v55 = vpop.f32.mrb[64].mxu0 }
 0x67c   :  { %2086 = vrot.lane.b32.xlu1 %v2079_v55, %s3162_s24  ;;  %v2823_v40 = vpop.f32.mrb[65].mxu0 }
 0x67d   :  { %v2082_v26 = vpop.f32.mrb[66].mxu0 }
 0x67e   :  { %v2824_v35 = vpop.f32.mrb[67].mxu0 }
 0x682   :  { %v928_v57 = vpop.permute.xlu0 %927 }
 0x683   :  { %931 = vst.msk [vmem:[#allocation2] sm:$0xff] %vm930_vm9, %v928_v57  ;;  %v2897_v57 = vld [vmem:[%s3876_s11 + $0x8] sm:$0xff]  }
 0x6a6   :  { %v1045_v30 = vpop.permute.xlu0 %1044 }
 0x6a7   :  { %1048 = vst.msk [vmem:[#allocation2] sm:$0xff] %vm1047_vm10, %v1045_v30 }
 0x6ae   :  { %v1162_v0 = vpop.permute.xlu0 %1161 }
 0x6af   :  { %1165 = vst.msk [vmem:[#allocation2] sm:$0xff] %vm1164_vm11, %v1162_v0 }
 0x6b6   :  { %v2090_v63 = vld [vmem:[#allocation2] sm:$0xff] }
 0x6be   :  { %v1391_v43 = vpop.permute.xlu1 %1390 }
 0x6bf   :  { %1393 = vst.msk [vmem:[#allocation2 + $0x8] sm:$0xff] %vm462_vm5, %v1391_v43 }
 0x6c6   :  { %v1507_v2 = vpop.permute.xlu1 %1506 }
 0x6c7   :  { %1509 = vst.msk [vmem:[#allocation2 + $0x8] sm:$0xff] %vm579_vm6, %v1507_v2 }
 0x6ce   :  { %v1623_v34 = vpop.permute.xlu1 %1622 }
 0x6cf   :  { %1625 = vst.msk [vmem:[#allocation2 + $0x8] sm:$0xff] %vm696_vm7, %v1623_v34 }
 0x6d6   :  { %v1739_v62 = vpop.permute.xlu1 %1738 }
 0x6d7   :  { %1741 = vst.msk [vmem:[#allocation2 + $0x8] sm:$0xff] %vm813_vm8, %v1739_v62 }
 0x6de   :  { %v1855_v37 = vpop.permute.xlu1 %1854 }
 0x6df   :  { %1857 = vst.msk [vmem:[#allocation2 + $0x8] sm:$0xff] %vm930_vm9, %v1855_v37 }
 0x6e6   :  { %v1971_v49 = vpop.permute.xlu1 %1970 }
 0x6e7   :  { %1973 = vst.msk [vmem:[#allocation2 + $0x8] sm:$0xff] %vm1047_vm10, %v1971_v49 }
 0x6ee   :  { %v2087_v7 = vpop.permute.xlu1 %2086 }
 0x6ef   :  { %2089 = vst.msk [vmem:[#allocation2 + $0x8] sm:$0xff] %vm1164_vm11, %v2087_v7  ;;  %v2533_v7 = vld [vmem:[#allocation11] ss:$0 sm:$0xff] }
 0x6f6   :  { %v2091_v44 = vld [vmem:[#allocation2 + $0x8] sm:$0xff] }
 0x6f7   :  { %v2092_v45 = vpack.c.bf16 %v2091_v44, %v2090_v63 }
 0x6f9   :  { %2830 = vmatmul.mubr.msk.bf16.vlgmr.msra.gmra.mrb[64].mxu1 %vm120_vm0, %v2092_v45 }
 0x6fa   :  { %2849 = vmatprep.mubr.msk.bf16.mxu1 %vm3132_vm1, %v3131_v15 }
 0x7cc   :  { %v2153_v61 = vpop.f32.mrb[64].mxu1 }
 0x7cd   :  { %v2154_v47 = vadd.f32 %v2527_v46, %v2153_v61  ;;  %v2831_v22 = vpop.f32.mrb[65].mxu1 }
 0x7ce   :  { %v2156_v48 = vpop.f32.mrb[66].mxu1 }
 0x7cf   :  { %v2157_v50 = vadd.f32 %v2527_v46, %v2156_v48  ;;  %v2832_v51 = vpop.f32.mrb[67].mxu1  ;;  %v2162_v52 = vsel %vm120_vm0, %v2154_v47, 0.0  ;;  %v2534_v46 = vld [vmem:[%s3875_s10] ss:$0 sm:$0xff] }
 0x7d0   :  { %2163 = vadd.xlane.f32.xlu0 %v2162_v52 }
 0x7d1   :  { %v2165_v53 = vsel %vm120_vm0, %v2157_v50, 0.0 }
 0x7d2   :  { %2166 = vadd.xlane.f32.xlu1 %v2165_v53 }
 0x85d   :  { %v2164_v4 = vpop.xlane.xlu0 %2163 }
 0x85e   :  { %v2168_v19 = vmul.f32 0.03125, %v2164_v4 }
 0x85f   :  { %v2167_v54 = vpop.xlane.xlu1 %2166 }
 0x860   :  { %v2170_v58 = vsub.f32 %v2154_v47, %v2168_v19  ;;  %v2169_v59 = vmul.f32 0.03125, %v2167_v54 }
 0x862   :  { %v2171_v3 = vsub.f32 %v2157_v50, %v2169_v59  ;;  %v2172_v42 = vmul.f32 %v2170_v58, %v2170_v58  ;;  %v2535_v50 = vld [vmem:[%s3877_s12] ss:$0 sm:$0xff] }
 0x864   :  { %v2174_v60 = vsel %vm120_vm0, %v2172_v42, 0.0  ;;  %v2173_v9 = vmul.f32 %v2171_v3, %v2171_v3 }
 0x865   :  { %2175 = vadd.xlane.f32.xlu0 %v2174_v60 }
 0x866   :  { %v2177_v27 = vsel %vm120_vm0, %v2173_v9, 0.0 }
 0x869   :  { %2178 = vadd.xlane.f32.xlu0 %v2177_v27 }
 0x8f2   :  { %v2176_v25 = vpop.xlane.xlu0 %2175 }
 0x8f3   :  { %v2180_v16 = vmul.f32 0.03125, %v2176_v25 }
 0x8f5   :  { %v2182_v39 = vadd.f32 1e-05, %v2180_v16 }
 0x8f6   :  { %v2179_v1 = vpop.xlane.xlu0 %2178 }
 0x8f7   :  { %2970 = vrsqrt.f32 %v2182_v39  ;;  %v2181_v28 = vmul.f32 0.03125, %v2179_v1 }
 0x8f9   :  { %v2183_v29 = vadd.f32 1e-05, %v2181_v28 }
 0x8fb   :  { %2972 = vrsqrt.f32 %v2183_v29 }
 0x901   :  { %v2971_v6 = vpop.eup %2970 }
 0x902   :  { %v2186_v10 = vmul.f32 %v2971_v6, %v2170_v58 }
 0x904   :  { %v2194_v33 = vmul.f32 %v2531_v8, %v2186_v10 }
 0x905   :  { %v2973_v36 = vpop.eup %2972 }
 0x906   :  { %v2202_v12 = vadd.f32 %v2532_v11, %v2194_v33  ;;  %v2187_v13 = vmul.f32 %v2973_v36, %v2171_v3 }
 0x908   :  { %v2204_v14 = vadd.f32 %v2202_v12, %v3345_v31  ;;  %v2195_v5 = vmul.f32 %v2531_v8, %v2187_v13 }
 0x90a   :  { %v2208_v17 = vsel %vm120_vm0, %v2204_v14, 0.0  ;;  %v2203_v18 = vadd.f32 %v2532_v11, %v2195_v5 }
 0x90b   :  { %2209 = vadd.xlane.f32.xlu0 %v2208_v17 }
 0x90c   :  { %v2205_v20 = vadd.f32 %v2203_v18, %v3347_v32  ;;  %v2896_v32 = vld [vmem:[%s3876_s11] sm:$0xff]  }
 0x90d   :  { %2834 = vmatpush3.bf16.msra.mxu0 %v2896_v32 }
 0x90e   :  { %v2211_v21 = vsel %vm120_vm0, %v2205_v20, 0.0  ;;  %2835 = vmatprep.subr.bf16.mxu0 %v3131_v15 }
 0x90f   :  { %2212 = vadd.xlane.f32.xlu1 %v2211_v21 }
 0x911   :  { %2836 = vmatpush3.bf16.msra.mxu0 %v2897_v57 }
 0x998   :  { %v2210_v38 = vpop.xlane.xlu0 %2209 }
 0x999   :  { %v2214_v41 = vmul.f32 0.03125, %v2210_v38 }
 0x99b   :  { %v2216_v23 = vsub.f32 %v2204_v14, %v2214_v41 }
 0x99c   :  { %v2213_v24 = vpop.xlane.xlu1 %2212 }
 0x99d   :  { %v2215_v56 = vmul.f32 0.03125, %v2213_v24  ;;  %v2218_v55 = vmul.f32 %v2216_v23, %v2216_v23  ;;  %v2898_v24 = vld [vmem:[%s3880_s15] sm:$0xff]  }
 0x99e   :  { %2842 = vmatpush3.bf16.msra.mxu1 %v2898_v24 }
 0x99f   :  { %v2217_v40 = vsub.f32 %v2205_v20, %v2215_v56  ;;  %v2220_v26 = vsel %vm120_vm0, %v2218_v55, 0.0  ;;  %2843 = vmatprep.subr.bf16.mxu1 %v3131_v15  ;;  %v2899_v56 = vld [vmem:[%s3880_s15 + $0x8] sm:$0xff]   ;;  %v2900_v55 = vld [vmem:[%s3880_s15 + $0x10] sm:$0xff]  }
 0x9a0   :  { %2221 = vadd.xlane.f32.xlu0 %v2220_v26 }
 0x9a1   :  { %v2219_v31 = vmul.f32 %v2217_v40, %v2217_v40 }
 0x9a2   :  { %2844 = vmatpush3.bf16.msra.mxu1 %v2899_v56 }
 0x9a3   :  { %v2223_v35 = vsel %vm120_vm0, %v2219_v31, 0.0  ;;  %2845 = vmatprep.subr.bf16.mxu1 %v3131_v15 }
 0x9a4   :  { %2224 = vadd.xlane.f32.xlu1 %v2223_v35 }
 0x9a6   :  { %2846 = vmatpush3.bf16.msra.mxu1 %v2900_v55 }
 0x9a7   :  { %2847 = vmatprep.subr.bf16.mxu1 %v3131_v15  ;;  %v2540_v15 = vld [vmem:[%s3879_s14] ss:$0 sm:$0xff] }
 0xa2d   :  { %v2222_v30 = vpop.xlane.xlu0 %2221 }
 0xa2e   :  { %v2226_v0 = vmul.f32 0.03125, %v2222_v30 }
 0xa30   :  { %v2228_v43 = vadd.f32 1e-05, %v2226_v0 }
 0xa31   :  { %v2225_v2 = vpop.xlane.xlu1 %2224 }
 0xa32   :  { %2974 = vrsqrt.f32 %v2228_v43  ;;  %v2227_v34 = vmul.f32 0.03125, %v2225_v2  ;;  %v2539_v43 = vld [vmem:[%s3878_s13] ss:$0 sm:$0xff]  ;;  %s3163_s13 = smov [#allocation12]  }
 0xa33   :  { %s2475_s26 = sshll.u32 %s3163_s13, 4  ;;  %s2476_s26 = int_to_ptr.vmem [resolvable:$true] %s2475_s26 }
 0xa34   :  { %v2229_v62 = vadd.f32 1e-05, %v2227_v34  ;;  %s3096_s14 = scalar_lea.vmem %s2476_s26, 256  ;;  %p3101_p13 = scmp.lt.s32.totalorder %s2476_s26, %s2476_s26 }
 0xa35   :  { %p3097_p12 = scmp.ne.s32.totalorder %s2476_s26, %s3096_s14  ;;  %p3102_p0 = scmp.lt.s32.totalorder %s3096_s14, %s3096_s14 }
 0xa36   :  { %2976 = vrsqrt.f32 %v2229_v62 }
 0xa37   :  { %p3103_p1 = por %p3102_p0, %p3101_p13 }
 0xa39   :  { %p3104_p2 = pnand %p3103_p1, %p3097_p12 }
 0xa3c   :  { %v2975_v37 = vpop.eup %2974 }
 0xa3d   :  { %v2232_v49 = vmul.f32 %v2975_v37, %v2216_v23 }
 0xa3f   :  { %v2240_v44 = vmul.f32 %v2533_v7, %v2232_v49 }
 0xa40   :  { %v2977_v63 = vpop.eup %2976 }
 0xa41   :  { %v2233_v45 = vmul.f32 %v2977_v63, %v2217_v40  ;;  %v3809_v47 = vadd.f32 %v2534_v46, %v2240_v44  ;;  %v2901_v40 = vld [vmem:[%s3880_s15 + $0x18] sm:$0xff]  }
 0xa42   :  { %2848 = vmatpush3.bf16.msra.mxu1 %v2901_v40 }
 0xa43   :  { %v2241_v61 = vmul.f32 %v2533_v7, %v2233_v45  ;;  %v2541_v45 = vld [vmem:[%s3881_s16] ss:$0 sm:$0xff] }
 0xa45   :  { %v3811_v22 = vadd.f32 %v2534_v46, %v2241_v61 }
 0xa47   :  { %v2250_v48 = vpack.c.bf16 %v3811_v22, %v3809_v47 }
 0xa49   :  { %2838 = vmatmul.mubr.msk.bf16.vlgmr.msra.gmra.mrb[68].mxu0 %vm120_vm0, %v2250_v48 }
 0xb1c   :  { %v2311_v51 = vpop.f32.mrb[68].mxu0 }
 0xb1d   :  { %v2312_v52 = vadd.f32 %v2535_v50, %v2311_v51  ;;  %v2839_v53 = vpop.f32.mrb[69].mxu0 }
 0xb1e   :  { %v2314_v4 = vpop.f32.mrb[70].mxu0 }
 0xb1f   :  { %v2320_v19 = vmul.f32 0.044715, %v2312_v52  ;;  %v2315_v54 = vadd.f32 %v2535_v50, %v2314_v4  ;;  %v2840_v58 = vpop.f32.mrb[71].mxu0  ;;  %v2318_v28 = vmul.f32 0.5, %v2312_v52 }
 0xb21   :  { %v2322_v59 = vmul.f32 %v2320_v19, %v2312_v52  ;;  %v2321_v3 = vmul.f32 0.044715, %v2315_v54  ;;  %v2319_v10 = vmul.f32 0.5, %v2315_v54 }
 0xb23   :  { %v2323_v42 = vmul.f32 %v2321_v3, %v2315_v54  ;;  %v2324_v60 = vmul.f32 %v2322_v59, %v2312_v52 }
 0xb25   :  { %v2326_v9 = vadd.f32 %v2324_v60, %v2312_v52  ;;  %v2325_v27 = vmul.f32 %v2323_v42, %v2315_v54 }
 0xb27   :  { %v2328_v25 = vmul.f32 0.7978846, %v2326_v9  ;;  %v2327_v16 = vadd.f32 %v2325_v27, %v2315_v54 }
 0xb29   :  { %2978 = vtanh.f32 %v2328_v25  ;;  %v2329_v39 = vmul.f32 0.7978846, %v2327_v16 }
 0xb2b   :  { %2980 = vtanh.f32 %v2329_v39 }
 0xb33   :  { %v2979_v1 = vpop.eup %2978 }
 0xb34   :  { %v2332_v29 = vadd.f32 1.0, %v2979_v1 }
 0xb35   :  { %v2981_v6 = vpop.eup %2980 }
 0xb36   :  { %v2334_v8 = vmul.f32 %v2332_v29, %v2318_v28  ;;  %v2333_v11 = vadd.f32 1.0, %v2981_v6 }
 0xb38   :  { %v2339_v33 = vsel %vm2338_vm12, %v2334_v8, 0.0  ;;  %v2335_v36 = vmul.f32 %v2333_v11, %v2319_v10 }
 0xb39   :  { %2340 = vadd.xlane.f32.xlu0 %v2339_v33 }
 0xb3a   :  { %v2342_v12 = vsel %vm2338_vm12, %v2335_v36, 0.0 }
 0xb3b   :  { %2343 = vadd.xlane.f32.xlu1 %v2342_v12 }
 0xbc6   :  { %v2341_v13 = vpop.xlane.xlu0 %2340 }
 0xbc7   :  { %v2346_v14 = vmul.f32 0.015625, %v2341_v13 }
 0xbc8   :  { %v2344_v5 = vpop.xlane.xlu1 %2343 }
 0xbc9   :  { %v2348_v17 = vsub.f32 %v2334_v8, %v2346_v14  ;;  %v2347_v18 = vmul.f32 0.015625, %v2344_v5 }
 0xbcb   :  { %v2349_v20 = vsub.f32 %v2335_v36, %v2347_v18  ;;  %v2350_v21 = vmul.f32 %v2348_v17, %v2348_v17 }
 0xbcd   :  { %v2352_v38 = vsel %vm2338_vm12, %v2350_v21, 0.0  ;;  %v2351_v41 = vmul.f32 %v2349_v20, %v2349_v20 }
 0xbce   :  { %2353 = vadd.xlane.f32.xlu0 %v2352_v38 }
 0xbcf   :  { %v2355_v23 = vsel %vm2338_vm12, %v2351_v41, 0.0 }
 0xbd0   :  { %2356 = vadd.xlane.f32.xlu1 %v2355_v23 }
 0xc5b   :  { %v2354_v26 = vpop.xlane.xlu0 %2353 }
 0xc5c   :  { %v2358_v31 = vmul.f32 0.015625, %v2354_v26 }
 0xc5d   :  { %v2357_v35 = vpop.xlane.xlu1 %2356 }
 0xc5e   :  { %v2360_v32 = vadd.f32 1e-05, %v2358_v31  ;;  %v2359_v57 = vmul.f32 0.015625, %v2357_v35 }
 0xc60   :  { %2982 = vrsqrt.f32 %v2360_v32  ;;  %v2361_v30 = vadd.f32 1e-05, %v2359_v57 }
 0xc62   :  { %2984 = vrsqrt.f32 %v2361_v30 }
 0xc6a   :  { %v2983_v0 = vpop.eup %2982 }
 0xc6b   :  { %v2364_v2 = vmul.f32 %v2983_v0, %v2348_v17 }
 0xc6c   :  { %v2985_v34 = vpop.eup %2984 }
 0xc6d   :  { %v2372_v62 = vmul.f32 %v2539_v43, %v2364_v2  ;;  %v2365_v37 = vmul.f32 %v2985_v34, %v2349_v20 }
 0xc6f   :  { %v2373_v49 = vmul.f32 %v2539_v43, %v2365_v37  ;;  %v2380_v7 = vadd.f32 %v2540_v15, %v2372_v62 }
 0xc71   :  { %v2381_v63 = vadd.f32 %v2540_v15, %v2373_v49 }
 0xc73   :  { %v2382_v44 = vpack.c.bf16 %v2381_v63, %v2380_v7 }
 0xc75   :  { %2850 = vmatmul.mubr.msk.bf16.vlgmr.msra.gmra.mrb[68].mxu1 %vm2338_vm12, %v2382_v44 }
 0xd48   :  { %v2459_v46 = vpop.f32.mrb[68].mxu1 }
 0xd49   :  { %v2460_v61 = vadd.f32 %v2541_v45, %v2459_v46  ;;  %v2851_v48 = vpop.f32.mrb[69].mxu1 }
 0xd4a   :  { %v2462_v50 = vpop.f32.mrb[70].mxu1 }
 0xd4b   :  { %v2466_v51 = vadd.f32 %v2460_v61, %v3809_v47  ;;  %v2463_v52 = vadd.f32 %v2541_v45, %v2462_v50  ;;  %v2852_v53 = vpop.f32.mrb[71].mxu1 }
 0xd4d   :  { %2468 = vst.msk [vmem:[#allocation12] sm:$0xff] %vm120_vm0, %v2466_v51  ;;  %v2467_v4 = vadd.f32 %v2463_v52, %v3811_v22 }
 0xd4f   :  { %2469 = vst.msk [vmem:[#allocation12 + $0x8] sm:$0xff] %vm120_vm0, %v2467_v4 }
 0xd50   :  { %3107 = shalt.err (!%p3104_p2)
}
 0xd51   :  { %s3108_s29 = scalar_lea.hbm %s3882_s17, 256 }
 0xd52   :  { %p3109_p3 = scmp.ne.s32.totalorder %s3882_s17, %s3108_s29  ;;  %p3112_p4 = scmp.lt.u32.totalorder %s3108_s29, %s3882_s17 }
 0xd54   :  { %p3114_p5 = pnand %p3112_p4, %p3109_p3 }
 0xd56   :  { %3117 = shalt.err (!%p3114_p5)
}
 0xd57   :  { %s3164_s21 = smov 128  }
 0xd58   :  { %2481 = dma.vmem_to_hbm [thread:$0]  %s2476_s26, 256, %s3882_s17, [#allocation5], %s3164_s21, %s3164_s21, %s3157_s25  }
 0xd59   :  { %3124 = dma.done.wait [#allocation5], 256  }
 0xd5a   :  { %3125 = vsyncadd [#allocation5], 4294967040 }
 0xd5b   :  { %2485 = vsyncpa [#allocation4], 1 }
 0xd5c   :  { %2486 = vsyncpa [#allocation7], 1 }
 0xd5d   :  { %2487 = vsyncpa [#allocation10], 1 }
 0xd5e   :  { %2488 = vsyncpa [#allocation5], 1 }

</bundles_post_ra>
